<compile_context>
chip_gen: v6e
topology: v6e:2x2x1
jax: 0.10.0
libtpu: 0.0.40
codegen_flags: <defaults>
</compile_context>

<pallas_src>
import jax
import jax.numpy as jnp
from jax.experimental import pallas as pl
from jax.experimental.pallas import tpu as pltpu

LATENT_DIM = 32
HIDDEN = 400
OUT_DIM = 6
NEG_SLOPE = 0.01   # nn.LeakyReLU default
BN_EPS = 1e-5      # nn.BatchNorm1d default


# ----------------------------- kernel helpers -----------------------------

def _leaky_relu(x):
    # f32 elementwise (VPU); keep out of bf16 on all generations.
    return jnp.where(x >= 0, x, NEG_SLOPE * x)


def _linear_bf16(h_f32, w_ref, b_ref):
    # bf16 x bf16 MXU matmul with f32 accumulation; bias add in f32.
    return jnp.dot(h_f32.astype(jnp.bfloat16), w_ref[...],
                   preferred_element_type=jnp.float32) + b_ref[...]


def _batchnorm_train_fused(h, gamma, beta):
    # Training-mode BatchNorm1d with a single reduction pass:
    #   mean = E[h], var = E[h^2] - mean^2 (biased), clamped at 0 for safety.
    # Then fold gamma/beta into one per-feature scale/shift so the per-element
    # cost is a single multiply-add.
    inv_b = 1.0 / h.shape[0]                       # static Python float
    s1 = jnp.sum(h, axis=0, keepdims=True)
    s2 = jnp.sum(h * h, axis=0, keepdims=True)
    mean = s1 * inv_b
    var = jnp.maximum(s2 * inv_b - mean * mean, 0.0)
    scale = gamma * jax.lax.rsqrt(var + BN_EPS)    # EUP rsqrt
    shift = beta - mean * scale
    return h * scale + shift


def generator_kernel(x_ref,
                     w1_ref, b1_ref, g1_ref, be1_ref,
                     w2_ref, b2_ref, g2_ref, be2_ref,
                     w3_ref, b3_ref, g3_ref, be3_ref,
                     w4_ref, b4_ref, g4_ref, be4_ref,
                     w5_ref, b5_ref,
                     out_ref):
    # Block 1: Linear -> LeakyReLU -> BatchNorm
    h = _linear_bf16(x_ref[...], w1_ref, b1_ref)
    h = _leaky_relu(h)
    h = _batchnorm_train_fused(h, g1_ref[...], be1_ref[...])

    # Block 2: Linear -> BatchNorm -> LeakyReLU
    h = _linear_bf16(h, w2_ref, b2_ref)
    h = _batchnorm_train_fused(h, g2_ref[...], be2_ref[...])
    h = _leaky_relu(h)

    # Block 3: Linear -> BatchNorm -> LeakyReLU
    h = _linear_bf16(h, w3_ref, b3_ref)
    h = _batchnorm_train_fused(h, g3_ref[...], be3_ref[...])
    h = _leaky_relu(h)

    # Block 4: Linear -> BatchNorm -> LeakyReLU
    h = _linear_bf16(h, w4_ref, b4_ref)
    h = _batchnorm_train_fused(h, g4_ref[...], be4_ref[...])
    h = _leaky_relu(h)

    # Output head: Linear(400 -> 6).  (B, 6) is a tiny masked store; not worth widening.
    out = _linear_bf16(h, w5_ref, b5_ref)
    out_ref[...] = out.astype(out_ref.dtype)


# ------------------------------- wrapper -----------------------------------

def generator_forward(x, params):
    """x: (B, LATENT_DIM) f32, params: flat list (bf16 weights, f32 bias/BN params)."""
    B = x.shape[0]
    inputs = [x] + list(params)
    return pl.pallas_call(
        generator_kernel,
        out_shape=jax.ShapeDtypeStruct((B, OUT_DIM), jnp.float32),
        # Whole arrays resident in VMEM (~1 MB bf16 weights + small activations):
        # fits comfortably on v5e/v6e/v7x at this batch size.
        in_specs=[pl.BlockSpec(memory_space=pltpu.MemorySpace.VMEM)] * len(inputs),
        out_specs=pl.BlockSpec(memory_space=pltpu.MemorySpace.VMEM),
        compiler_params=pltpu.CompilerParams(vmem_limit_bytes=32 * 1024 * 1024),
    )(*inputs)


# --------------------------- parameter creation -----------------------------

def init_params(key):
    """Deterministic init mimicking PyTorch defaults.

    Linear: weight & bias ~ U(-1/sqrt(fan_in), 1/sqrt(fan_in)); weights stored
    (in, out) and cast to bf16 (MXU-native input dtype on all generations).
    Biases stay f32.  BatchNorm1d: gamma = 1, beta = 0 (f32, shape (1, F)).
    """
    dims = [(LATENT_DIM, HIDDEN), (HIDDEN, HIDDEN), (HIDDEN, HIDDEN),
            (HIDDEN, HIDDEN), (HIDDEN, OUT_DIM)]
    params = []
    for i, (fan_in, fan_out) in enumerate(dims):
        key, kw, kb = jax.random.split(key, 3)
        bound = 1.0 / jnp.sqrt(fan_in)
        w = jax.random.uniform(kw, (fan_in, fan_out), jnp.float32, -bound, bound)
        b = jax.random.uniform(kb, (1, fan_out), jnp.float32, -bound, bound)
        params += [w.astype(jnp.bfloat16), b]
        if i < 4:  # first four linears are followed by a BatchNorm1d(400)
            params += [jnp.ones((1, HIDDEN), jnp.float32),
                       jnp.zeros((1, HIDDEN), jnp.float32)]
    return params


# ----------------------------- reference (JAX) ------------------------------

def generator_ref(x, params):
    """Pure-JAX reference with the same bf16 matmul inputs / f32 accumulation."""
    (w1, b1, g1, be1, w2, b2, g2, be2,
     w3, b3, g3, be3, w4, b4, g4, be4, w5, b5) = params

    def linear(h, w, b):
        return jnp.dot(h.astype(jnp.bfloat16), w,
                       preferred_element_type=jnp.float32) + b

    def bn(h, g, be):
        # Canonical two-pass form (matches PyTorch training-mode BN semantics).
        m = h.mean(0, keepdims=True)
        v = ((h - m) ** 2).mean(0, keepdims=True)
        return (h - m) / jnp.sqrt(v + BN_EPS) * g + be

    def lrelu(h):
        return jnp.where(h >= 0, h, NEG_SLOPE * h)

    h = linear(x, w1, b1)
    h = bn(lrelu(h), g1, be1)
    h = lrelu(bn(linear(h, w2, b2), g2, be2))
    h = lrelu(bn(linear(h, w3, b3), g3, be3))
    h = lrelu(bn(linear(h, w4, b4), g4, be4))
    return linear(h, w5, b5)


# --------------------------------- main --------------------------------------

if __name__ == "__main__":
    key = jax.random.PRNGKey(0)
    key_x, key_p = jax.random.split(key)

    B = 8  # BatchNorm1d (training mode) needs batch > 1
    x = jax.random.normal(key_x, (B, LATENT_DIM), jnp.float32)
    params = init_params(key_p)

    out = generator_forward(x, params)
    out = jax.block_until_ready(out)

    ref = generator_ref(x, params)
    assert out.shape == (B, OUT_DIM)
    # bf16 MXU inputs + fused BN (E[x^2]-mean^2) vs two-pass f32 reference:
    # accumulation is f32 in both, so differences are tiny; 1e-2 is comfortably safe.
    assert jnp.allclose(out, ref, atol=1e-2, rtol=1e-2), "mismatch vs JAX reference"

    print("KERNEL_OK")
</pallas_src>

<mosaic_0001>
module attributes {stable_mosaic.version = 11 : i64} {
  func.func @generator_kernel(%arg0: memref<8x32xf32, #tpu.memory_space<vmem>>, %arg1: memref<32x400xbf16, #tpu.memory_space<vmem>>, %arg2: memref<1x400xf32, #tpu.memory_space<vmem>>, %arg3: memref<1x400xf32, #tpu.memory_space<vmem>>, %arg4: memref<1x400xf32, #tpu.memory_space<vmem>>, %arg5: memref<400x400xbf16, #tpu.memory_space<vmem>>, %arg6: memref<1x400xf32, #tpu.memory_space<vmem>>, %arg7: memref<1x400xf32, #tpu.memory_space<vmem>>, %arg8: memref<1x400xf32, #tpu.memory_space<vmem>>, %arg9: memref<400x400xbf16, #tpu.memory_space<vmem>>, %arg10: memref<1x400xf32, #tpu.memory_space<vmem>>, %arg11: memref<1x400xf32, #tpu.memory_space<vmem>>, %arg12: memref<1x400xf32, #tpu.memory_space<vmem>>, %arg13: memref<400x400xbf16, #tpu.memory_space<vmem>>, %arg14: memref<1x400xf32, #tpu.memory_space<vmem>>, %arg15: memref<1x400xf32, #tpu.memory_space<vmem>>, %arg16: memref<1x400xf32, #tpu.memory_space<vmem>>, %arg17: memref<400x6xbf16, #tpu.memory_space<vmem>>, %arg18: memref<1x6xf32, #tpu.memory_space<vmem>>, %arg19: memref<8x6xf32, #tpu.memory_space<vmem>>) attributes {dimension_semantics = [], scalar_prefetch = 0 : i64, scratch_operands = 0 : i64, tpu.core_type = #tpu.core_type<tc>} {
    %c0 = arith.constant 0 : index
    %c0_0 = arith.constant 0 : index
    %0 = vector.load %arg0[%c0, %c0_0] : memref<8x32xf32, #tpu.memory_space<vmem>>, vector<8x32xf32>
    %1 = arith.truncf %0 : vector<8x32xf32> to vector<8x32xbf16>
    %c0_1 = arith.constant 0 : index
    %c0_2 = arith.constant 0 : index
    %2 = vector.load %arg1[%c0_1, %c0_2] : memref<32x400xbf16, #tpu.memory_space<vmem>>, vector<32x400xbf16>
    %cst = arith.constant dense<0.000000e+00> : vector<8x400xf32>
    %3 = tpu.matmul %1, %2, %cst {dimension_numbers = #tpu.dot_dimension_numbers<[1], [0], [0], [1], [0, 0, 1, 1], [], []>} : vector<8x32xbf16>, vector<32x400xbf16>, vector<8x400xf32> -> vector<8x400xf32>
    %c0_3 = arith.constant 0 : index
    %c0_4 = arith.constant 0 : index
    %4 = vector.load %arg2[%c0_3, %c0_4] : memref<1x400xf32, #tpu.memory_space<vmem>>, vector<1x400xf32>
    %5 = vector.broadcast %4 : vector<1x400xf32> to vector<8x400xf32>
    %6 = arith.addf %3, %5 : vector<8x400xf32>
    %cst_5 = arith.constant 0.000000e+00 : f32
    %7 = vector.broadcast %cst_5 : f32 to vector<8x400xf32>
    %8 = arith.cmpf oge, %6, %7 : vector<8x400xf32>
    %cst_6 = arith.constant 0.00999999977 : f32
    %9 = vector.broadcast %cst_6 : f32 to vector<8x400xf32>
    %10 = arith.mulf %9, %6 : vector<8x400xf32>
    %11 = arith.select %8, %6, %10 : vector<8x400xi1>, vector<8x400xf32>
    %c0_7 = arith.constant 0 : index
    %c0_8 = arith.constant 0 : index
    %12 = vector.load %arg3[%c0_7, %c0_8] : memref<1x400xf32, #tpu.memory_space<vmem>>, vector<1x400xf32>
    %c0_9 = arith.constant 0 : index
    %c0_10 = arith.constant 0 : index
    %13 = vector.load %arg4[%c0_9, %c0_10] : memref<1x400xf32, #tpu.memory_space<vmem>>, vector<1x400xf32>
    %cst_11 = arith.constant dense<0.000000e+00> : vector<400xf32>
    %14 = vector.multi_reduction <add>, %11, %cst_11 [0] : vector<8x400xf32> to vector<400xf32>
    %15 = vector.shape_cast %14 : vector<400xf32> to vector<1x400xf32>
    %16 = arith.mulf %11, %11 : vector<8x400xf32>
    %cst_12 = arith.constant dense<0.000000e+00> : vector<400xf32>
    %17 = vector.multi_reduction <add>, %16, %cst_12 [0] : vector<8x400xf32> to vector<400xf32>
    %18 = vector.shape_cast %17 : vector<400xf32> to vector<1x400xf32>
    %cst_13 = arith.constant 1.250000e-01 : f32
    %19 = vector.broadcast %cst_13 : f32 to vector<1x400xf32>
    %20 = arith.mulf %15, %19 : vector<1x400xf32>
    %cst_14 = arith.constant 1.250000e-01 : f32
    %21 = vector.broadcast %cst_14 : f32 to vector<1x400xf32>
    %22 = arith.mulf %18, %21 : vector<1x400xf32>
    %23 = arith.mulf %20, %20 : vector<1x400xf32>
    %24 = arith.subf %22, %23 : vector<1x400xf32>
    %cst_15 = arith.constant 0.000000e+00 : f32
    %25 = vector.broadcast %cst_15 : f32 to vector<1x400xf32>
    %26 = arith.maximumf %24, %25 : vector<1x400xf32>
    %cst_16 = arith.constant 9.99999974E-6 : f32
    %27 = vector.broadcast %cst_16 : f32 to vector<1x400xf32>
    %28 = arith.addf %26, %27 : vector<1x400xf32>
    %29 = math.rsqrt %28 : vector<1x400xf32>
    %30 = arith.mulf %12, %29 : vector<1x400xf32>
    %31 = arith.mulf %20, %30 : vector<1x400xf32>
    %32 = arith.subf %13, %31 : vector<1x400xf32>
    %33 = vector.broadcast %30 : vector<1x400xf32> to vector<8x400xf32>
    %34 = arith.mulf %11, %33 : vector<8x400xf32>
    %35 = vector.broadcast %32 : vector<1x400xf32> to vector<8x400xf32>
    %36 = arith.addf %34, %35 : vector<8x400xf32>
    %37 = arith.truncf %36 : vector<8x400xf32> to vector<8x400xbf16>
    %c0_17 = arith.constant 0 : index
    %c0_18 = arith.constant 0 : index
    %38 = vector.load %arg5[%c0_17, %c0_18] : memref<400x400xbf16, #tpu.memory_space<vmem>>, vector<400x400xbf16>
    %cst_19 = arith.constant dense<0.000000e+00> : vector<8x400xf32>
    %39 = tpu.matmul %37, %38, %cst_19 {dimension_numbers = #tpu.dot_dimension_numbers<[1], [0], [0], [1], [0, 0, 1, 1], [], []>} : vector<8x400xbf16>, vector<400x400xbf16>, vector<8x400xf32> -> vector<8x400xf32>
    %c0_20 = arith.constant 0 : index
    %c0_21 = arith.constant 0 : index
    %40 = vector.load %arg6[%c0_20, %c0_21] : memref<1x400xf32, #tpu.memory_space<vmem>>, vector<1x400xf32>
    %41 = vector.broadcast %40 : vector<1x400xf32> to vector<8x400xf32>
    %42 = arith.addf %39, %41 : vector<8x400xf32>
    %c0_22 = arith.constant 0 : index
    %c0_23 = arith.constant 0 : index
    %43 = vector.load %arg7[%c0_22, %c0_23] : memref<1x400xf32, #tpu.memory_space<vmem>>, vector<1x400xf32>
    %c0_24 = arith.constant 0 : index
    %c0_25 = arith.constant 0 : index
    %44 = vector.load %arg8[%c0_24, %c0_25] : memref<1x400xf32, #tpu.memory_space<vmem>>, vector<1x400xf32>
    %cst_26 = arith.constant dense<0.000000e+00> : vector<400xf32>
    %45 = vector.multi_reduction <add>, %42, %cst_26 [0] : vector<8x400xf32> to vector<400xf32>
    %46 = vector.shape_cast %45 : vector<400xf32> to vector<1x400xf32>
    %47 = arith.mulf %42, %42 : vector<8x400xf32>
    %cst_27 = arith.constant dense<0.000000e+00> : vector<400xf32>
    %48 = vector.multi_reduction <add>, %47, %cst_27 [0] : vector<8x400xf32> to vector<400xf32>
    %49 = vector.shape_cast %48 : vector<400xf32> to vector<1x400xf32>
    %cst_28 = arith.constant 1.250000e-01 : f32
    %50 = vector.broadcast %cst_28 : f32 to vector<1x400xf32>
    %51 = arith.mulf %46, %50 : vector<1x400xf32>
    %cst_29 = arith.constant 1.250000e-01 : f32
    %52 = vector.broadcast %cst_29 : f32 to vector<1x400xf32>
    %53 = arith.mulf %49, %52 : vector<1x400xf32>
    %54 = arith.mulf %51, %51 : vector<1x400xf32>
    %55 = arith.subf %53, %54 : vector<1x400xf32>
    %cst_30 = arith.constant 0.000000e+00 : f32
    %56 = vector.broadcast %cst_30 : f32 to vector<1x400xf32>
    %57 = arith.maximumf %55, %56 : vector<1x400xf32>
    %cst_31 = arith.constant 9.99999974E-6 : f32
    %58 = vector.broadcast %cst_31 : f32 to vector<1x400xf32>
    %59 = arith.addf %57, %58 : vector<1x400xf32>
    %60 = math.rsqrt %59 : vector<1x400xf32>
    %61 = arith.mulf %43, %60 : vector<1x400xf32>
    %62 = arith.mulf %51, %61 : vector<1x400xf32>
    %63 = arith.subf %44, %62 : vector<1x400xf32>
    %64 = vector.broadcast %61 : vector<1x400xf32> to vector<8x400xf32>
    %65 = arith.mulf %42, %64 : vector<8x400xf32>
    %66 = vector.broadcast %63 : vector<1x400xf32> to vector<8x400xf32>
    %67 = arith.addf %65, %66 : vector<8x400xf32>
    %cst_32 = arith.constant 0.000000e+00 : f32
    %68 = vector.broadcast %cst_32 : f32 to vector<8x400xf32>
    %69 = arith.cmpf oge, %67, %68 : vector<8x400xf32>
    %cst_33 = arith.constant 0.00999999977 : f32
    %70 = vector.broadcast %cst_33 : f32 to vector<8x400xf32>
    %71 = arith.mulf %70, %67 : vector<8x400xf32>
    %72 = arith.select %69, %67, %71 : vector<8x400xi1>, vector<8x400xf32>
    %73 = arith.truncf %72 : vector<8x400xf32> to vector<8x400xbf16>
    %c0_34 = arith.constant 0 : index
    %c0_35 = arith.constant 0 : index
    %74 = vector.load %arg9[%c0_34, %c0_35] : memref<400x400xbf16, #tpu.memory_space<vmem>>, vector<400x400xbf16>
    %cst_36 = arith.constant dense<0.000000e+00> : vector<8x400xf32>
    %75 = tpu.matmul %73, %74, %cst_36 {dimension_numbers = #tpu.dot_dimension_numbers<[1], [0], [0], [1], [0, 0, 1, 1], [], []>} : vector<8x400xbf16>, vector<400x400xbf16>, vector<8x400xf32> -> vector<8x400xf32>
    %c0_37 = arith.constant 0 : index
    %c0_38 = arith.constant 0 : index
    %76 = vector.load %arg10[%c0_37, %c0_38] : memref<1x400xf32, #tpu.memory_space<vmem>>, vector<1x400xf32>
    %77 = vector.broadcast %76 : vector<1x400xf32> to vector<8x400xf32>
    %78 = arith.addf %75, %77 : vector<8x400xf32>
    %c0_39 = arith.constant 0 : index
    %c0_40 = arith.constant 0 : index
    %79 = vector.load %arg11[%c0_39, %c0_40] : memref<1x400xf32, #tpu.memory_space<vmem>>, vector<1x400xf32>
    %c0_41 = arith.constant 0 : index
    %c0_42 = arith.constant 0 : index
    %80 = vector.load %arg12[%c0_41, %c0_42] : memref<1x400xf32, #tpu.memory_space<vmem>>, vector<1x400xf32>
    %cst_43 = arith.constant dense<0.000000e+00> : vector<400xf32>
    %81 = vector.multi_reduction <add>, %78, %cst_43 [0] : vector<8x400xf32> to vector<400xf32>
    %82 = vector.shape_cast %81 : vector<400xf32> to vector<1x400xf32>
    %83 = arith.mulf %78, %78 : vector<8x400xf32>
    %cst_44 = arith.constant dense<0.000000e+00> : vector<400xf32>
    %84 = vector.multi_reduction <add>, %83, %cst_44 [0] : vector<8x400xf32> to vector<400xf32>
    %85 = vector.shape_cast %84 : vector<400xf32> to vector<1x400xf32>
    %cst_45 = arith.constant 1.250000e-01 : f32
    %86 = vector.broadcast %cst_45 : f32 to vector<1x400xf32>
    %87 = arith.mulf %82, %86 : vector<1x400xf32>
    %cst_46 = arith.constant 1.250000e-01 : f32
    %88 = vector.broadcast %cst_46 : f32 to vector<1x400xf32>
    %89 = arith.mulf %85, %88 : vector<1x400xf32>
    %90 = arith.mulf %87, %87 : vector<1x400xf32>
    %91 = arith.subf %89, %90 : vector<1x400xf32>
    %cst_47 = arith.constant 0.000000e+00 : f32
    %92 = vector.broadcast %cst_47 : f32 to vector<1x400xf32>
    %93 = arith.maximumf %91, %92 : vector<1x400xf32>
    %cst_48 = arith.constant 9.99999974E-6 : f32
    %94 = vector.broadcast %cst_48 : f32 to vector<1x400xf32>
    %95 = arith.addf %93, %94 : vector<1x400xf32>
    %96 = math.rsqrt %95 : vector<1x400xf32>
    %97 = arith.mulf %79, %96 : vector<1x400xf32>
    %98 = arith.mulf %87, %97 : vector<1x400xf32>
    %99 = arith.subf %80, %98 : vector<1x400xf32>
    %100 = vector.broadcast %97 : vector<1x400xf32> to vector<8x400xf32>
    %101 = arith.mulf %78, %100 : vector<8x400xf32>
    %102 = vector.broadcast %99 : vector<1x400xf32> to vector<8x400xf32>
    %103 = arith.addf %101, %102 : vector<8x400xf32>
    %cst_49 = arith.constant 0.000000e+00 : f32
    %104 = vector.broadcast %cst_49 : f32 to vector<8x400xf32>
    %105 = arith.cmpf oge, %103, %104 : vector<8x400xf32>
    %cst_50 = arith.constant 0.00999999977 : f32
    %106 = vector.broadcast %cst_50 : f32 to vector<8x400xf32>
    %107 = arith.mulf %106, %103 : vector<8x400xf32>
    %108 = arith.select %105, %103, %107 : vector<8x400xi1>, vector<8x400xf32>
    %109 = arith.truncf %108 : vector<8x400xf32> to vector<8x400xbf16>
    %c0_51 = arith.constant 0 : index
    %c0_52 = arith.constant 0 : index
    %110 = vector.load %arg13[%c0_51, %c0_52] : memref<400x400xbf16, #tpu.memory_space<vmem>>, vector<400x400xbf16>
    %cst_53 = arith.constant dense<0.000000e+00> : vector<8x400xf32>
    %111 = tpu.matmul %109, %110, %cst_53 {dimension_numbers = #tpu.dot_dimension_numbers<[1], [0], [0], [1], [0, 0, 1, 1], [], []>} : vector<8x400xbf16>, vector<400x400xbf16>, vector<8x400xf32> -> vector<8x400xf32>
    %c0_54 = arith.constant 0 : index
    %c0_55 = arith.constant 0 : index
    %112 = vector.load %arg14[%c0_54, %c0_55] : memref<1x400xf32, #tpu.memory_space<vmem>>, vector<1x400xf32>
    %113 = vector.broadcast %112 : vector<1x400xf32> to vector<8x400xf32>
    %114 = arith.addf %111, %113 : vector<8x400xf32>
    %c0_56 = arith.constant 0 : index
    %c0_57 = arith.constant 0 : index
    %115 = vector.load %arg15[%c0_56, %c0_57] : memref<1x400xf32, #tpu.memory_space<vmem>>, vector<1x400xf32>
    %c0_58 = arith.constant 0 : index
    %c0_59 = arith.constant 0 : index
    %116 = vector.load %arg16[%c0_58, %c0_59] : memref<1x400xf32, #tpu.memory_space<vmem>>, vector<1x400xf32>
    %cst_60 = arith.constant dense<0.000000e+00> : vector<400xf32>
    %117 = vector.multi_reduction <add>, %114, %cst_60 [0] : vector<8x400xf32> to vector<400xf32>
    %118 = vector.shape_cast %117 : vector<400xf32> to vector<1x400xf32>
    %119 = arith.mulf %114, %114 : vector<8x400xf32>
    %cst_61 = arith.constant dense<0.000000e+00> : vector<400xf32>
    %120 = vector.multi_reduction <add>, %119, %cst_61 [0] : vector<8x400xf32> to vector<400xf32>
    %121 = vector.shape_cast %120 : vector<400xf32> to vector<1x400xf32>
    %cst_62 = arith.constant 1.250000e-01 : f32
    %122 = vector.broadcast %cst_62 : f32 to vector<1x400xf32>
    %123 = arith.mulf %118, %122 : vector<1x400xf32>
    %cst_63 = arith.constant 1.250000e-01 : f32
    %124 = vector.broadcast %cst_63 : f32 to vector<1x400xf32>
    %125 = arith.mulf %121, %124 : vector<1x400xf32>
    %126 = arith.mulf %123, %123 : vector<1x400xf32>
    %127 = arith.subf %125, %126 : vector<1x400xf32>
    %cst_64 = arith.constant 0.000000e+00 : f32
    %128 = vector.broadcast %cst_64 : f32 to vector<1x400xf32>
    %129 = arith.maximumf %127, %128 : vector<1x400xf32>
    %cst_65 = arith.constant 9.99999974E-6 : f32
    %130 = vector.broadcast %cst_65 : f32 to vector<1x400xf32>
    %131 = arith.addf %129, %130 : vector<1x400xf32>
    %132 = math.rsqrt %131 : vector<1x400xf32>
    %133 = arith.mulf %115, %132 : vector<1x400xf32>
    %134 = arith.mulf %123, %133 : vector<1x400xf32>
    %135 = arith.subf %116, %134 : vector<1x400xf32>
    %136 = vector.broadcast %133 : vector<1x400xf32> to vector<8x400xf32>
    %137 = arith.mulf %114, %136 : vector<8x400xf32>
    %138 = vector.broadcast %135 : vector<1x400xf32> to vector<8x400xf32>
    %139 = arith.addf %137, %138 : vector<8x400xf32>
    %cst_66 = arith.constant 0.000000e+00 : f32
    %140 = vector.broadcast %cst_66 : f32 to vector<8x400xf32>
    %141 = arith.cmpf oge, %139, %140 : vector<8x400xf32>
    %cst_67 = arith.constant 0.00999999977 : f32
    %142 = vector.broadcast %cst_67 : f32 to vector<8x400xf32>
    %143 = arith.mulf %142, %139 : vector<8x400xf32>
    %144 = arith.select %141, %139, %143 : vector<8x400xi1>, vector<8x400xf32>
    %145 = arith.truncf %144 : vector<8x400xf32> to vector<8x400xbf16>
    %c0_68 = arith.constant 0 : index
    %c0_69 = arith.constant 0 : index
    %146 = vector.load %arg17[%c0_68, %c0_69] : memref<400x6xbf16, #tpu.memory_space<vmem>>, vector<400x6xbf16>
    %cst_70 = arith.constant dense<0.000000e+00> : vector<8x6xf32>
    %147 = tpu.matmul %145, %146, %cst_70 {dimension_numbers = #tpu.dot_dimension_numbers<[1], [0], [0], [1], [0, 0, 1, 1], [], []>} : vector<8x400xbf16>, vector<400x6xbf16>, vector<8x6xf32> -> vector<8x6xf32>
    %c0_71 = arith.constant 0 : index
    %c0_72 = arith.constant 0 : index
    %148 = vector.load %arg18[%c0_71, %c0_72] : memref<1x6xf32, #tpu.memory_space<vmem>>, vector<1x6xf32>
    %149 = vector.broadcast %148 : vector<1x6xf32> to vector<8x6xf32>
    %150 = arith.addf %147, %149 : vector<8x6xf32>
    %c0_73 = arith.constant 0 : index
    %c0_74 = arith.constant 0 : index
    %151 = vector.load %arg19[%c0_73, %c0_74] : memref<8x6xf32, #tpu.memory_space<vmem>>, vector<8x6xf32>
    tpu.vector_store %arg19[%c0_73, %c0_74], %150 {strides = array<i32>} : memref<8x6xf32, #tpu.memory_space<vmem>>, vector<8x6xf32>,
    return
  }
}

</mosaic_0001>

<bundles_post_ra>
// kernel: tpu_custom_call.1
= control target key start
LH: loop header
LB: loop body
LE: loop exit
PB: predicated region body
PF: predicated region fallthrough
CT: control target
= control target key end

     0   :  { %s5334_s0 = inlined_call_operand.vmem [shape: f32[8,32], index: 0, kind: input, shape index: {}]   ;;  %s5335_s1 = inlined_call_operand.vmem [shape: bf16[32,400], index: 1, kind: input, shape index: {}]   ;;  %s5336_s2 = inlined_call_operand.vmem [shape: f32[1,400], index: 2, kind: input, shape index: {}]   ;;  %s5337_s3 = inlined_call_operand.vmem [shape: f32[1,400], index: 3, kind: input, shape index: {}]   ;;  %s5338_s4 = inlined_call_operand.vmem [shape: f32[1,400], index: 4, kind: input, shape index: {}]   ;;  %s5339_s5 = inlined_call_operand.hbm [shape: bf16[400,400], index: 5, kind: input, shape index: {}]   ;;  %s5340_s6 = inlined_call_operand.vmem [shape: f32[1,400], index: 6, kind: input, shape index: {}]   ;;  %s5341_s7 = inlined_call_operand.vmem [shape: f32[1,400], index: 7, kind: input, shape index: {}]   ;;  %s5342_s8 = inlined_call_operand.vmem [shape: f32[1,400], index: 8, kind: input, shape index: {}]   ;;  %s5343_s9 = inlined_call_operand.hbm [shape: bf16[400,400], index: 9, kind: input, shape index: {}]   ;;  %s5344_s10 = inlined_call_operand.vmem [shape: f32[1,400], index: 10, kind: input, shape index: {}]   ;;  %s5345_s11 = inlined_call_operand.vmem [shape: f32[1,400], index: 11, kind: input, shape index: {}]   ;;  %s5346_s12 = inlined_call_operand.vmem [shape: f32[1,400], index: 12, kind: input, shape index: {}]   ;;  %s5347_s13 = inlined_call_operand.hbm [shape: bf16[400,400], index: 13, kind: input, shape index: {}]   ;;  %s5348_s14 = inlined_call_operand.vmem [shape: f32[1,400], index: 14, kind: input, shape index: {}]   ;;  %s5349_s15 = inlined_call_operand.vmem [shape: f32[1,400], index: 15, kind: input, shape index: {}]   ;;  %s5350_s16 = inlined_call_operand.vmem [shape: f32[1,400], index: 16, kind: input, shape index: {}]   ;;  %s5351_s17 = inlined_call_operand.vmem [shape: bf16[400,6], index: 17, kind: input, shape index: {}]   ;;  %s5352_s18 = inlined_call_operand.vmem [shape: f32[1,6], index: 18, kind: input, shape index: {}]   ;;  %s5353_s19 = inlined_call_operand.hbm [shape: f32[8,6], index: 19, kind: output, shape index: {}]  }
   0x1   :  { %5355 = sst [smem:[#allocation12_spill]] %s5334_s0 }
   0x2   :  { %5356 = sst [smem:[#allocation13_spill]] %s5335_s1 }
   0x3   :  { %5357 = sst [smem:[#allocation14_spill]] %s5336_s2 }
   0x4   :  { %5358 = sst [smem:[#allocation15_spill]] %s5337_s3 }
   0x5   :  { %24 = vsyncpa [#allocation3], 0 }
   0x6   :  { %25 = vsyncpa [#allocation6], 0 }
   0x7   :  { %26 = vsyncpa [#allocation4], 0  ;;  %s4773_s0 = smov [#allocation5]   ;;  %s4774_s20 = smov [#allocation2]  }
   0x8   :  { %s60_s30 = sshll.u32 %s4773_s0, 4  ;;  %s42_s21 = sshll.u32 %s4774_s20, 4  ;;  %s61_s30 = int_to_ptr.vmem [resolvable:$true] %s60_s30  ;;  %s43_s21 = int_to_ptr.vmem [resolvable:$true] %s42_s21 }
   0x9   :  { %s4695_s1 = scalar_lea.vmem %s61_s30, 12800  ;;  %p4700_p1 = scmp.lt.s32.totalorder %s61_s30, %s61_s30 }
   0xa   :  { %p4696_p0 = scmp.ne.s32.totalorder %s61_s30, %s4695_s1  ;;  %p4701_p2 = scmp.lt.s32.totalorder %s4695_s1, %s4695_s1 }
   0xc   :  { %p4702_p3 = por %p4701_p2, %p4700_p1 }
   0xe   :  { %p4703_p4 = pnand %p4702_p3, %p4696_p0 }
  0x10   :  { %4706 = shalt.err (!%p4703_p4)
}
  0x11   :  { %s4775_s22 = smov 256   ;;  %s4776_s2 = smov 16  }
  0x12   :  { %66 = dma.hbm_to_vmem [thread:$0]  %s5343_s9, 12800, %s61_s30, [#allocation6], %s4775_s22, %s4775_s22, %s4776_s2  }
  0x13   :  { %s4715_s25 = scalar_lea.vmem %s43_s21, 12800  ;;  %p4720_p6 = scmp.lt.s32.totalorder %s43_s21, %s43_s21 }
  0x14   :  { %p4716_p5 = scmp.ne.s32.totalorder %s43_s21, %s4715_s25  ;;  %p4721_p7 = scmp.lt.s32.totalorder %s4715_s25, %s4715_s25 }
  0x16   :  { %p4722_p8 = por %p4721_p7, %p4720_p6 }
  0x18   :  { %p4723_p9 = pnand %p4722_p8, %p4716_p5 }
  0x1a   :  { %4726 = shalt.err (!%p4723_p9)
}
  0x1b   :  { %48 = dma.hbm_to_vmem [thread:$0]  %s5339_s5, 12800, %s43_s21, [#allocation3], %s4775_s22, %s4775_s22, %s4776_s2  }
  0x1c   :  { %s4777_s27 = smov [#allocation7]  }
  0x1d   :  { %s78_s28 = sshll.u32 %s4777_s27, 4  ;;  %s79_s28 = int_to_ptr.vmem [resolvable:$true] %s78_s28 }
  0x1e   :  { %s4735_s29 = scalar_lea.vmem %s79_s28, 12800  ;;  %p4740_p11 = scmp.lt.s32.totalorder %s79_s28, %s79_s28 }
  0x1f   :  { %p4736_p10 = scmp.ne.s32.totalorder %s79_s28, %s4735_s29  ;;  %p4741_p12 = scmp.lt.s32.totalorder %s4735_s29, %s4735_s29 }
  0x21   :  { %p4742_p13 = por %p4741_p12, %p4740_p11 }
  0x23   :  { %p4743_p0 = pnand %p4742_p13, %p4736_p10 }
  0x25   :  { %4746 = shalt.err (!%p4743_p0)
}
  0x26   :  { %84 = dma.hbm_to_vmem [thread:$0]  %s5347_s13, 12800, %s79_s28, [#allocation6], %s4775_s22, %s4775_s22, %s4776_s2  }
  0x27   :  { %4767 = dma.done.wait [#allocation3], 12800  }
  0x28   :  { %4768 = vsyncadd [#allocation3], 4294954496 }
  0x29   :  { %4769 = dma.done.wait [#allocation6], 25600  }
  0x2a   :  { %4770 = vsyncadd [#allocation6], 4294941696  ;;  %v4778_v0 = vmov 0   ;;  %s5359_s20 = sld [smem:[#allocation13_spill]]  ;;  %vm177_vm0 = vcmask 261120   ;;  %v117_v63 = vlaneseq  ;;  %vm295_vm3 = vcmask 130048  }
  0x2b   :  { %213 = vmatprep.mubr.bf16.mxu0 %v4778_v0  ;;  %254 = vmatprep.mubr.bf16.mxu1 %v4778_v0  ;;  %s5360_s30 = sld [smem:[#allocation12_spill]]  ;;  %v4182_v11 = vld [vmem:[#allocation2 + $0xe4] ss:$16 sps:$4 sm:$0xff]   ;;  %v4180_v12 = vld [vmem:[#allocation2 + $0xe0] ss:$16 sps:$4 sm:$0xff]  }
  0x2c   :  { %v4185_v13 = vld [vmem:[#allocation2 + $0xc4] ss:$16 sps:$4 sm:$0xff]   ;;  %v4183_v14 = vld [vmem:[#allocation2 + $0xc0] ss:$16 sps:$4 sm:$0xff]   ;;  %v4257_v61 = vld [vmem:[#allocation2 + $0xec] ss:$16 sps:$4 sm:$0xff]  }
  0x2d   :  { %v4188_v15 = vld [vmem:[#allocation2 + $0xa4] ss:$16 sps:$4 sm:$0xff]   ;;  %v4186_v16 = vld [vmem:[#allocation2 + $0xa0] ss:$16 sps:$4 sm:$0xff]   ;;  %v4260_v62 = vld [vmem:[#allocation2 + $0x2ec] ss:$16 sps:$4 sm:$0xff]  }
  0x2e   :  { %v4191_v17 = vld [vmem:[#allocation2 + $0x84] ss:$16 sps:$4 sm:$0xff]   ;;  %v4189_v18 = vld [vmem:[#allocation2 + $0x80] ss:$16 sps:$4 sm:$0xff]   ;;  %s5361_s1 = sld [smem:[#allocation14_spill]] }
  0x2f   :  { %v4194_v19 = vld [vmem:[#allocation2 + $0x64] ss:$16 sps:$4 sm:$0xff]   ;;  %v4192_v20 = vld [vmem:[#allocation2 + $0x60] ss:$16 sps:$4 sm:$0xff]   ;;  %s5362_s22 = sld [smem:[#allocation15_spill]] }
  0x30   :  { %v4168_v1 = vld [vmem:[%s5359_s20 + $0x24] ss:$16 sps:$4 sm:$0xff]   ;;  %v4170_v2 = vld [vmem:[%s5359_s20 + $0x2c] ss:$16 sps:$4 sm:$0xff]   ;;  %v4172_v3 = vld [vmem:[%s5359_s20 + $0x20] ss:$16 sps:$4 sm:$0xff]  }
  0x31   :  { %193 = vmatprep.subr.bf16.mxu0 %v4168_v1  ;;  %v4173_v4 = vld [vmem:[%s5359_s20 + $0x28] ss:$16 sps:$4 sm:$0xff]   ;;  %234 = vmatprep.subr.bf16.mxu1 %v4170_v2  ;;  %v4174_v5 = vld [vmem:[%s5359_s20 + $0x4] ss:$16 sps:$4 sm:$0xff]   ;;  %v4176_v6 = vld [vmem:[%s5359_s20 + $0xc] ss:$16 sps:$4 sm:$0xff]  }
  0x32   :  { %194 = vmatpush1.bf16.msra.mxu0 %v4172_v3  ;;  %235 = vmatpush1.bf16.msra.mxu1 %v4173_v4  ;;  %v4178_v7 = vld [vmem:[%s5359_s20] ss:$16 sps:$4 sm:$0xff]   ;;  %v4179_v8 = vld [vmem:[%s5359_s20 + $0x8] ss:$16 sps:$4 sm:$0xff]   ;;  %v4197_v21 = vld [vmem:[#allocation2 + $0x44] ss:$16 sps:$4 sm:$0xff]  }
  0x33   :  { %195 = vmatprep.subr.bf16.mxu0 %v4174_v5  ;;  %v105_v9 = vld [vmem:[%s5360_s30] sm:$0xff]  ;;  %236 = vmatprep.subr.bf16.mxu1 %v4176_v6  ;;  %v4919_v1 = vshrl.u32 %v117_v63, 7  ;;  %s4780_s30 = smov [#allocation8]  }
  0x34   :  { %v106_v10 = vpack.c.bf16 %v105_v9, %v105_v9  ;;  %v4195_v22 = vld [vmem:[#allocation2 + $0x40] ss:$16 sps:$4 sm:$0xff]   ;;  %v4200_v23 = vld [vmem:[#allocation2 + $0x24] ss:$16 sps:$4 sm:$0xff]  }
  0x35   :  { %v4198_v24 = vld [vmem:[#allocation2 + $0x20] ss:$16 sps:$4 sm:$0xff]   ;;  %v4203_v25 = vld [vmem:[#allocation2 + $0x4] ss:$16 sps:$4 sm:$0xff]   ;;  %v4922_v2 = vsub.s32 0, %v4919_v1  ;;  %v4925_v3 = vsub.s32 2, %v4919_v1 }
  0x36   :  { %196 = vmatpush1.bf16.msra.mxu0 %v4178_v7  ;;  %237 = vmatpush1.bf16.msra.mxu1 %v4179_v8  ;;  %v4206_v26 = vld [vmem:[#allocation2 + $0x2e4] ss:$16 sps:$4 sm:$0xff]   ;;  %v4201_v27 = vld [vmem:[#allocation2] ss:$16 sps:$4 sm:$0xff]   ;;  %v4931_v5 = vsub.s32 1, %v4919_v1  ;;  %v4934_v6 = vsub.s32 3, %v4919_v1 }
  0x37   :  { %1103 = vmatprep.subr.bf16.mxu0 %v4182_v11  ;;  %v4204_v28 = vld [vmem:[#allocation2 + $0x2e0] ss:$16 sps:$4 sm:$0xff]   ;;  %1144 = vmatprep.subr.bf16.mxu1 %v4206_v26  ;;  %v4209_v29 = vld [vmem:[#allocation2 + $0x1e4] ss:$16 sps:$4 sm:$0xff]  }
  0x38   :  { %v4212_v30 = vld [vmem:[#allocation2 + $0x2c4] ss:$16 sps:$4 sm:$0xff]   ;;  %v4207_v31 = vld [vmem:[#allocation2 + $0x1e0] ss:$16 sps:$4 sm:$0xff]  }
  0x39   :  { %3803 = vmatmul.mubr.msk.bf16.vlgmr.msra.gmra.mxu0 %vm177_vm0, %v106_v10  ;;  %3804 = vmatmul.mubr.msk.bf16.vlgmr.msra.gmra.mxu1 %vm177_vm0, %v106_v10  ;;  %v4210_v32 = vld [vmem:[#allocation2 + $0x2c0] ss:$16 sps:$4 sm:$0xff]   ;;  %v4215_v33 = vld [vmem:[#allocation2 + $0x1c4] ss:$16 sps:$4 sm:$0xff]  }
  0x3a   :  { %1104 = vmatpush1.bf16.msra.mxu0 %v4180_v12  ;;  %1145 = vmatpush1.bf16.msra.mxu1 %v4204_v28  ;;  %v4218_v34 = vld [vmem:[#allocation2 + $0x2a4] ss:$16 sps:$4 sm:$0xff]   ;;  %v4213_v35 = vld [vmem:[#allocation2 + $0x1c0] ss:$16 sps:$4 sm:$0xff]  }
  0x3b   :  { %1105 = vmatprep.subr.bf16.mxu0 %v4185_v13  ;;  %1146 = vmatprep.subr.bf16.mxu1 %v4212_v30  ;;  %v4216_v36 = vld [vmem:[#allocation2 + $0x2a0] ss:$16 sps:$4 sm:$0xff]   ;;  %v4221_v37 = vld [vmem:[#allocation2 + $0x1a4] ss:$16 sps:$4 sm:$0xff]  }
  0x3c   :  { %v4224_v38 = vld [vmem:[#allocation2 + $0x284] ss:$16 sps:$4 sm:$0xff]   ;;  %v4219_v39 = vld [vmem:[#allocation2 + $0x1a0] ss:$16 sps:$4 sm:$0xff]  }
  0x3d   :  { %v4222_v40 = vld [vmem:[#allocation2 + $0x280] ss:$16 sps:$4 sm:$0xff]   ;;  %v4227_v41 = vld [vmem:[#allocation2 + $0x184] ss:$16 sps:$4 sm:$0xff]  }
  0x3e   :  { %1106 = vmatpush1.bf16.msra.mxu0 %v4183_v14  ;;  %1147 = vmatpush1.bf16.msra.mxu1 %v4210_v32  ;;  %v4230_v42 = vld [vmem:[#allocation2 + $0x264] ss:$16 sps:$4 sm:$0xff]   ;;  %v4225_v43 = vld [vmem:[#allocation2 + $0x180] ss:$16 sps:$4 sm:$0xff]  }
  0x3f   :  { %1107 = vmatprep.subr.bf16.mxu0 %v4188_v15  ;;  %1148 = vmatprep.subr.bf16.mxu1 %v4218_v34  ;;  %v4228_v44 = vld [vmem:[#allocation2 + $0x260] ss:$16 sps:$4 sm:$0xff]   ;;  %v4233_v45 = vld [vmem:[#allocation2 + $0x164] ss:$16 sps:$4 sm:$0xff]  }
  0x40   :  { %v4236_v46 = vld [vmem:[#allocation2 + $0x244] ss:$16 sps:$4 sm:$0xff]   ;;  %v4231_v47 = vld [vmem:[#allocation2 + $0x160] ss:$16 sps:$4 sm:$0xff]  }
  0x41   :  { %v4234_v48 = vld [vmem:[#allocation2 + $0x240] ss:$16 sps:$4 sm:$0xff]   ;;  %v4239_v50 = vld [vmem:[#allocation2 + $0x144] ss:$16 sps:$4 sm:$0xff]  }
  0x42   :  { %1108 = vmatpush1.bf16.msra.mxu0 %v4186_v16  ;;  %1149 = vmatpush1.bf16.msra.mxu1 %v4216_v36  ;;  %v4237_v49 = vld [vmem:[#allocation2 + $0x140] ss:$16 sps:$4 sm:$0xff]   ;;  %v4242_v52 = vld [vmem:[#allocation2 + $0x224] ss:$16 sps:$4 sm:$0xff]  }
  0x43   :  { %1109 = vmatprep.subr.bf16.mxu0 %v4191_v17  ;;  %1150 = vmatprep.subr.bf16.mxu1 %v4224_v38  ;;  %v4240_v51 = vld [vmem:[#allocation2 + $0x220] ss:$16 sps:$4 sm:$0xff]   ;;  %v4245_v53 = vld [vmem:[#allocation2 + $0x124] ss:$16 sps:$4 sm:$0xff]  }
  0x44   :  { %v4248_v54 = vld [vmem:[#allocation2 + $0x204] ss:$16 sps:$4 sm:$0xff]   ;;  %v4243_v55 = vld [vmem:[#allocation2 + $0x120] ss:$16 sps:$4 sm:$0xff]  }
  0x45   :  { %v4246_v56 = vld [vmem:[#allocation2 + $0x200] ss:$16 sps:$4 sm:$0xff]   ;;  %v4251_v57 = vld [vmem:[#allocation2 + $0x104] ss:$16 sps:$4 sm:$0xff]  }
  0x46   :  { %1110 = vmatpush1.bf16.msra.mxu0 %v4189_v18  ;;  %1151 = vmatpush1.bf16.msra.mxu1 %v4222_v40  ;;  %v4254_v58 = vld [vmem:[#allocation2 + $0x304] ss:$16 sps:$4 sm:$0xff]   ;;  %v4249_v59 = vld [vmem:[#allocation2 + $0x100] ss:$16 sps:$4 sm:$0xff]  }
  0x47   :  { %1111 = vmatprep.subr.bf16.mxu0 %v4194_v19  ;;  %1152 = vmatprep.subr.bf16.mxu1 %v4230_v42  ;;  %v4252_v60 = vld [vmem:[#allocation2 + $0x300] ss:$16 sps:$4 sm:$0xff]  }
  0x48   :  { %v115_v4 = vld [vmem:[%s5361_s1] sm:$0xf] }
  0x49   :  { %v120_v7 = vrot.slane %v115_v4, %v4922_v2  ;;  %v128_v8 = vrot.slane %v115_v4, %v4925_v3  ;;  %v124_v11 = vrot.slane %v115_v4, %v4931_v5  ;;  %v132_v12 = vrot.slane %v115_v4, %v4934_v6 }
  0x4a   :  { %1112 = vmatpush1.bf16.msra.mxu0 %v4192_v20  ;;  %1153 = vmatpush1.bf16.msra.mxu1 %v4228_v44 }
  0x4b   :  { %1113 = vmatprep.subr.bf16.mxu0 %v4197_v21  ;;  %1154 = vmatprep.subr.bf16.mxu1 %v4236_v46 }
  0x4e   :  { %1114 = vmatpush1.bf16.msra.mxu0 %v4195_v22  ;;  %1155 = vmatpush1.bf16.msra.mxu1 %v4234_v48 }
  0x4f   :  { %1115 = vmatprep.subr.bf16.mxu0 %v4200_v23  ;;  %1156 = vmatprep.subr.bf16.mxu1 %v4242_v52 }
  0x52   :  { %1116 = vmatpush1.bf16.msra.mxu0 %v4198_v24  ;;  %1157 = vmatpush1.bf16.msra.mxu1 %v4240_v51 }
  0x53   :  { %1117 = vmatprep.subr.bf16.mxu0 %v4203_v25  ;;  %1158 = vmatprep.subr.bf16.mxu1 %v4248_v54 }
  0x56   :  { %1118 = vmatpush1.bf16.msra.mxu0 %v4201_v27  ;;  %1159 = vmatpush1.bf16.msra.mxu1 %v4246_v56 }
  0x57   :  { %1119 = vmatprep.subr.bf16.mxu0 %v4209_v29  ;;  %1174 = vmatprep.subr.bf16.mxu1 %v4254_v58 }
  0x5a   :  { %1120 = vmatpush2.bf16.msra.mxu0 %v4207_v31  ;;  %1175 = vmatpush2.bf16.msra.mxu1 %v4252_v60 }
  0x5b   :  { %1121 = vmatprep.subr.bf16.mxu0 %v4215_v33  ;;  %1185 = vmatprep.subr.bf16.mxu1 %v4257_v61 }
  0x5e   :  { %1122 = vmatpush2.bf16.msra.mxu0 %v4213_v35 }
  0x5f   :  { %1123 = vmatprep.subr.bf16.mxu0 %v4221_v37 }
  0x62   :  { %1124 = vmatpush2.bf16.msra.mxu0 %v4219_v39 }
  0x63   :  { %1125 = vmatprep.subr.bf16.mxu0 %v4227_v41 }
  0x66   :  { %1126 = vmatpush2.bf16.msra.mxu0 %v4225_v43 }
  0x67   :  { %1127 = vmatprep.subr.bf16.mxu0 %v4233_v45 }
  0x6a   :  { %1128 = vmatpush2.bf16.msra.mxu0 %v4231_v47 }
  0x6b   :  { %1129 = vmatprep.subr.bf16.mxu0 %v4239_v50 }
  0x6e   :  { %1130 = vmatpush2.bf16.msra.mxu0 %v4237_v49 }
  0x6f   :  { %1131 = vmatprep.subr.bf16.mxu0 %v4245_v53 }
  0x72   :  { %1132 = vmatpush2.bf16.msra.mxu0 %v4243_v55 }
  0x73   :  { %1133 = vmatprep.subr.bf16.mxu0 %v4251_v57 }
  0x76   :  { %1134 = vmatpush2.bf16.msra.mxu0 %v4249_v59 }
  0x77   :  { %1226 = vmatprep.subr.bf16.mxu0 %v4260_v62 }
  0xf9   :  { %v215_v9 = vpop.f32.mrf.mxu0  ;;  %v256_v10 = vpop.f32.mrf.mxu1 }
  0xfa   :  { %v216_v13 = vadd.f32 %v215_v9, %v120_v7  ;;  %v257_v14 = vadd.f32 %v256_v10, %v128_v8 }
  0xfb   :  { %v217_v15 = vpop.f32.mrf.mxu0  ;;  %v258_v16 = vpop.f32.mrf.mxu1 }
  0xfc   :  { %vm263_vm1 = vcmp.ge.f32.partialorder %v216_v13, 0.0  ;;  %v267_v17 = vmul.f32 0.01, %v216_v13  ;;  %vm265_vm2 = vcmp.ge.f32.partialorder %v257_v14, 0.0  ;;  %v269_v18 = vmul.f32 0.01, %v257_v14 }
  0xfd   :  { %v218_v19 = vadd.f32 %v217_v15, %v124_v11  ;;  %v259_v20 = vadd.f32 %v258_v16, %v132_v12  ;;  %v219_v21 = vpop.f32.mrf.mxu0  ;;  %v260_v22 = vpop.f32.mrf.mxu1 }
  0xfe   :  { %v4940_v23 = vsel %vm263_vm1, %v216_v13, %v267_v17  ;;  %v4942_v24 = vsel %vm265_vm2, %v257_v14, %v269_v18  ;;  %vm3777_vm2 = vcmask 48128  }
  0xff   :  { %v277_v25 = vrot.slane %v4940_v23, 4  ;;  %v303_v26 = vmul.f32 %v4940_v23, %v4940_v23  ;;  %v289_v27 = vrot.slane %v4942_v24, 4  ;;  %v305_v28 = vmul.f32 %v4942_v24, %v4942_v24  ;;  %v220_v29 = vpop.f32.mrf.mxu0  ;;  %v261_v30 = vpop.f32.mrf.mxu1 }
 0x100   :  { %vm264_vm4 = vcmp.ge.f32.partialorder %v218_v19, 0.0  ;;  %v268_v31 = vmul.f32 0.01, %v218_v19  ;;  %vm266_vm5 = vcmp.ge.f32.partialorder %v259_v20, 0.0  ;;  %v270_v32 = vmul.f32 0.01, %v259_v20 }
 0x101   :  { %v278_v33 = vadd.f32 %v277_v25, %v4940_v23  ;;  %v307_v34 = vrot.slane %v303_v26, 4  ;;  %v290_v35 = vadd.f32 %v289_v27, %v4942_v24  ;;  %v319_v36 = vrot.slane %v305_v28, 4 }
 0x102   :  { %v4952_v37 = vsel %vm264_vm4, %v218_v19, %v268_v31  ;;  %v4954_v38 = vsel %vm266_vm5, %v259_v20, %v270_v32 }
 0x103   :  { %v279_v39 = vrot.slane %v278_v33, 2  ;;  %v308_v40 = vadd.f32 %v307_v34, %v303_v26  ;;  %v291_v41 = vrot.slane %v290_v35, 2  ;;  %v320_v42 = vadd.f32 %v319_v36, %v305_v28 }
 0x104   :  { %v283_v43 = vrot.slane %v4952_v37, 4  ;;  %v304_v44 = vmul.f32 %v4952_v37, %v4952_v37  ;;  %v296_v45 = vsel %vm295_vm3, %v4954_v38, 0.0  ;;  %v306_v46 = vmul.f32 %v4954_v38, %v4954_v38 }
 0x105   :  { %v280_v47 = vadd.f32 %v279_v39, %v278_v33  ;;  %v309_v48 = vrot.slane %v308_v40, 2  ;;  %v292_v49 = vadd.f32 %v291_v41, %v290_v35  ;;  %v321_v50 = vrot.slane %v320_v42, 2 }
 0x106   :  { %v284_v51 = vadd.f32 %v283_v43, %v4952_v37  ;;  %v313_v52 = vrot.slane %v304_v44, 4  ;;  %v297_v53 = vrot.slane %v296_v45, 4  ;;  %v325_v54 = vsel %vm295_vm3, %v306_v46, 0.0 }
 0x107   :  { %v281_v55 = vrot.slane %v280_v47, 1  ;;  %v310_v56 = vadd.f32 %v309_v48, %v308_v40  ;;  %v293_v57 = vrot.slane %v292_v49, 1  ;;  %v322_v58 = vadd.f32 %v321_v50, %v320_v42 }
 0x108   :  { %v285_v59 = vrot.slane %v284_v51, 2  ;;  %v314_v60 = vadd.f32 %v313_v52, %v304_v44  ;;  %v298_v61 = vadd.f32 %v297_v53, %v296_v45  ;;  %v326_v62 = vrot.slane %v325_v54, 4 }
 0x109   :  { %v282_v63 = vadd.f32 %v281_v55, %v280_v47  ;;  %v311_v4 = vrot.slane %v310_v56, 1  ;;  %v294_v7 = vadd.f32 %v293_v57, %v292_v49  ;;  %v323_v8 = vrot.slane %v322_v58, 1 }
 0x10a   :  { %v286_v9 = vadd.f32 %v285_v59, %v284_v51  ;;  %v315_v10 = vrot.slane %v314_v60, 2  ;;  %v299_v11 = vrot.slane %v298_v61, 2  ;;  %v327_v12 = vadd.f32 %v326_v62, %v325_v54 }
 0x10b   :  { %v312_v13 = vadd.f32 %v311_v4, %v310_v56  ;;  %v4965_v14 = vmul.f32 0.125, %v282_v63  ;;  %v324_v15 = vadd.f32 %v323_v8, %v322_v58  ;;  %v334_v16 = vmul.f32 0.125, %v294_v7 }
 0x10c   :  { %v287_v17 = vrot.slane %v286_v9, 1  ;;  %v316_v18 = vadd.f32 %v315_v10, %v314_v60  ;;  %v300_v19 = vadd.f32 %v299_v11, %v298_v61  ;;  %v328_v20 = vrot.slane %v327_v12, 2  ;;  %v275_v10 = vld [vmem:[%s5362_s22] sm:$0xf] }
 0x10d   :  { %v336_v21 = vmul.f32 0.125, %v312_v13  ;;  %v340_v22 = vmul.f32 %v4965_v14, %v4965_v14  ;;  %v338_v25 = vmul.f32 0.125, %v324_v15  ;;  %v342_v26 = vmul.f32 %v334_v16, %v334_v16 }
 0x10e   :  { %v288_v27 = vadd.f32 %v287_v17, %v286_v9  ;;  %v317_v28 = vrot.slane %v316_v18, 1  ;;  %v301_v29 = vrot.slane %v300_v19, 1  ;;  %v329_v30 = vadd.f32 %v328_v20, %v327_v12 }
 0x10f   :  { %v344_v31 = vsub.f32 %v336_v21, %v340_v22  ;;  %v346_v32 = vsub.f32 %v338_v25, %v342_v26  ;;  %v4779_v55 = vmov 1966171168  }
 0x110   :  { %v318_v33 = vadd.f32 %v317_v28, %v316_v18  ;;  %v333_v34 = vmul.f32 0.125, %v288_v27  ;;  %v302_v35 = vadd.f32 %v301_v29, %v300_v19  ;;  %v330_v36 = vrot.slane %v329_v30, 1  ;;  %v276_v29 = vld [vmem:[%s5338_s4] sm:$0xf] }
 0x111   :  { %v348_v39 = vmax.f32 %v344_v31, 0.0  ;;  %v350_v44 = vmax.f32 %v346_v32, 0.0  ;;  %v367_v56 = vunpack.c.l.s4 %v4779_v55  ;;  %v4278_v55 = vld [vmem:[#allocation2 + $0x28c] ss:$16 sps:$4 sm:$0xff]  }
 0x112   :  { %v337_v40 = vmul.f32 0.125, %v318_v33  ;;  %v341_v41 = vmul.f32 %v333_v34, %v333_v34  ;;  %v331_v42 = vadd.f32 %v330_v36, %v329_v30  ;;  %v335_v43 = vmul.f32 0.125, %v302_v35 }
 0x113   :  { %v352_v48 = vadd.f32 1e-05, %v348_v39  ;;  %v354_v51 = vadd.f32 1e-05, %v350_v44  ;;  %v368_v57 = vunpack.c.0.s8 %v367_v56  ;;  %v4273_v56 = vld [vmem:[#allocation2 + $0x88] ss:$16 sps:$4 sm:$0xff]  }
 0x114   :  { %v345_v45 = vsub.f32 %v337_v40, %v341_v41  ;;  %v339_v46 = vmul.f32 0.125, %v331_v42  ;;  %v343_v47 = vmul.f32 %v335_v43, %v335_v43 }
 0x115   :  { %4655 = vrsqrt.f32 %v352_v48  ;;  %v4970_v59 = vsub.s32 %v368_v57, %v4919_v1  ;;  %v4261_v48 = vld [vmem:[#allocation2 + $0xc8] ss:$16 sps:$4 sm:$0xff]  }
 0x116   :  { %v349_v49 = vmax.f32 %v345_v45, 0.0  ;;  %v347_v50 = vsub.f32 %v339_v46, %v343_v47  ;;  %v4255_v45 = vld [vmem:[#allocation2 + $0xe8] ss:$16 sps:$4 sm:$0xff]   ;;  %v4266_v47 = vld [vmem:[#allocation2 + $0x2cc] ss:$16 sps:$4 sm:$0xff]  }
 0x117   :  { %v4276_v57 = vld [vmem:[#allocation2 + $0x288] ss:$16 sps:$4 sm:$0xff]  }
 0x118   :  { %v353_v52 = vadd.f32 1e-05, %v349_v49  ;;  %v351_v53 = vmax.f32 %v347_v50, 0.0  ;;  %v4264_v49 = vld [vmem:[#allocation2 + $0x2c8] ss:$16 sps:$4 sm:$0xff]  }
 0x119   :  { %v4269_v50 = vld [vmem:[#allocation2 + $0xac] ss:$16 sps:$4 sm:$0xff]  }
 0x11a   :  { %4657 = vrsqrt.f32 %v353_v52  ;;  %v355_v54 = vadd.f32 1e-05, %v351_v53  ;;  %v4267_v52 = vld [vmem:[#allocation2 + $0xa8] ss:$16 sps:$4 sm:$0xff]  }
 0x11b   :  { %4659 = vrsqrt.f32 %v354_v51  ;;  %v4272_v51 = vld [vmem:[#allocation2 + $0x2ac] ss:$16 sps:$4 sm:$0xff]   ;;  %v4270_v53 = vld [vmem:[#allocation2 + $0x2a8] ss:$16 sps:$4 sm:$0xff]  }
 0x11c   :  { %4661 = vrsqrt.f32 %v355_v54  ;;  %v4275_v54 = vld [vmem:[#allocation2 + $0x8c] ss:$16 sps:$4 sm:$0xff]  }
 0x122   :  { %v4656_v58 = vpop.eup %4655 }
 0x127   :  { %v4658_v60 = vpop.eup %4657 }
 0x128   :  { %v4660_v61 = vpop.eup %4659  ;;  %v364_v62 = vcombine.low %v4656_v58, %v4658_v60  ;;  %v4281_v58 = vld [vmem:[#allocation2 + $0x6c] ss:$16 sps:$4 sm:$0xff]  }
 0x129   :  { %v4662_v63 = vpop.eup %4661  ;;  %v4284_v60 = vld [vmem:[#allocation2 + $0x26c] ss:$16 sps:$4 sm:$0xff]  }
 0x12a   :  { %v365_v4 = vcombine.low %v4660_v61, %v4662_v63  ;;  %v372_v7 = vrot.slane %v364_v62, %v4970_v59  ;;  %v4279_v61 = vld [vmem:[#allocation2 + $0x68] ss:$16 sps:$4 sm:$0xff]   ;;  %v4287_v63 = vld [vmem:[#allocation2 + $0x4c] ss:$16 sps:$4 sm:$0xff]  }
 0x12b   :  { %v4282_v62 = vld [vmem:[#allocation2 + $0x268] ss:$16 sps:$4 sm:$0xff]  }
 0x12c   :  { %v379_v8 = vrot.slane %v365_v4, %v4970_v59  ;;  %v4290_v4 = vld [vmem:[#allocation2 + $0x24c] ss:$16 sps:$4 sm:$0xff]  }
 0x12e   :  { %v380_v9 = vcombine.low %v372_v7, %v379_v8  ;;  %v4285_v7 = vld [vmem:[#allocation2 + $0x48] ss:$16 sps:$4 sm:$0xff]  }
 0x12f   :  { %v4288_v8 = vld [vmem:[#allocation2 + $0x248] ss:$16 sps:$4 sm:$0xff]  }
 0x130   :  { %v387_v11 = vrot.slane %v380_v9, %v4970_v59  ;;  %v4293_v9 = vld [vmem:[#allocation2 + $0x2c] ss:$16 sps:$4 sm:$0xff]  }
 0x132   :  { %v389_v12 = vmul.f32 %v387_v11, %v275_v10  ;;  %v4296_v10 = vld [vmem:[#allocation2 + $0x22c] ss:$16 sps:$4 sm:$0xff]   ;;  %v4291_v11 = vld [vmem:[#allocation2 + $0x28] ss:$16 sps:$4 sm:$0xff]  }
 0x134   :  { %v402_v1 = vrot.slane %v389_v12, %v4925_v3  ;;  %v406_v13 = vrot.slane %v389_v12, %v4934_v6  ;;  %v394_v15 = vrot.slane %v389_v12, %v4922_v2  ;;  %v398_v17 = vrot.slane %v389_v12, %v4931_v5  ;;  %v4294_v12 = vld [vmem:[#allocation2 + $0x228] ss:$16 sps:$4 sm:$0xff]  }
 0x136   :  { %v413_v18 = vmul.f32 %v402_v1, %v334_v16  ;;  %v414_v19 = vmul.f32 %v406_v13, %v335_v43  ;;  %v411_v20 = vmul.f32 %v394_v15, %v4965_v14  ;;  %v412_v21 = vmul.f32 %v398_v17, %v333_v34 }
 0x137   :  { %v448_v16 = vmul.f32 %v406_v13, %v4954_v38  ;;  %v446_v32 = vmul.f32 %v398_v17, %v4952_v37  ;;  %v445_v14 = vmul.f32 %v394_v15, %v4940_v23  ;;  %v447_v33 = vmul.f32 %v402_v1, %v4942_v24  ;;  %v4258_v37 = vld [vmem:[#allocation2 + $0x2e8] ss:$16 sps:$4 sm:$0xff]   ;;  %v4263_v24 = vld [vmem:[#allocation2 + $0xcc] ss:$16 sps:$4 sm:$0xff]  }
 0x138   :  { %v420_v22 = vcombine.low %v413_v18, %v414_v19  ;;  %v419_v25 = vcombine.low %v411_v20, %v412_v21  ;;  %v4299_v1 = vld [vmem:[#allocation2 + $0xc] ss:$16 sps:$4 sm:$0xff]   ;;  %v4297_v15 = vld [vmem:[#allocation2 + $0x8] ss:$16 sps:$4 sm:$0xff]  }
 0x139   :  { %v4302_v13 = vld [vmem:[#allocation2 + $0x20c] ss:$16 sps:$4 sm:$0xff]   ;;  %v4300_v17 = vld [vmem:[#allocation2 + $0x208] ss:$16 sps:$4 sm:$0xff]  }
 0x13a   :  { %v434_v26 = vrot.slane %v420_v22, %v4970_v59  ;;  %v427_v27 = vrot.slane %v419_v25, %v4970_v59  ;;  %v4305_v18 = vld [vmem:[#allocation2 + $0x1ec] ss:$16 sps:$4 sm:$0xff]   ;;  %v4303_v20 = vld [vmem:[#allocation2 + $0x1e8] ss:$16 sps:$4 sm:$0xff]  }
 0x13b   :  { %v4308_v19 = vld [vmem:[#allocation2 + $0x30c] ss:$16 sps:$4 sm:$0xff]   ;;  %v4306_v21 = vld [vmem:[#allocation2 + $0x308] ss:$16 sps:$4 sm:$0xff]  }
 0x13c   :  { %v435_v28 = vcombine.low %v427_v27, %v434_v26  ;;  %v4311_v22 = vld [vmem:[#allocation2 + $0x1cc] ss:$16 sps:$4 sm:$0xff]   ;;  %v4309_v25 = vld [vmem:[#allocation2 + $0x1c8] ss:$16 sps:$4 sm:$0xff]  }
 0x13d   :  { %v4314_v26 = vld [vmem:[#allocation2 + $0x1ac] ss:$16 sps:$4 sm:$0xff]   ;;  %v4312_v27 = vld [vmem:[#allocation2 + $0x1a8] ss:$16 sps:$4 sm:$0xff]  }
 0x13e   :  { %v442_v30 = vrot.slane %v435_v28, %v4970_v59  ;;  %v4317_v28 = vld [vmem:[#allocation2 + $0x18c] ss:$16 sps:$4 sm:$0xff]  }
 0x140   :  { %v444_v31 = vsub.f32 %v276_v29, %v442_v30  ;;  %v4315_v29 = vld [vmem:[#allocation2 + $0x188] ss:$16 sps:$4 sm:$0xff]   ;;  %v4320_v30 = vld [vmem:[#allocation2 + $0x16c] ss:$16 sps:$4 sm:$0xff]  }
 0x142   :  { %v457_v34 = vrot.slane %v444_v31, %v4931_v5  ;;  %v465_v35 = vrot.slane %v444_v31, %v4934_v6  ;;  %v453_v36 = vrot.slane %v444_v31, %v4922_v2  ;;  %v461_v39 = vrot.slane %v444_v31, %v4925_v3  ;;  %v4318_v31 = vld [vmem:[#allocation2 + $0x168] ss:$16 sps:$4 sm:$0xff]  }
 0x144   :  { %v471_v40 = vadd.f32 %v457_v34, %v446_v32  ;;  %v473_v41 = vadd.f32 %v465_v35, %v448_v16  ;;  %v470_v42 = vadd.f32 %v453_v36, %v445_v14  ;;  %v472_v43 = vadd.f32 %v461_v39, %v447_v33  ;;  %v4323_v16 = vld [vmem:[#allocation2 + $0x14c] ss:$16 sps:$4 sm:$0xff]   ;;  %v4321_v32 = vld [vmem:[#allocation2 + $0x148] ss:$16 sps:$4 sm:$0xff]   ;;  %v4332_v36 = vld [vmem:[#allocation5 + $0xe4] ss:$16 sps:$4 sm:$0xff]  }
 0x145   :  { %v4326_v14 = vld [vmem:[#allocation2 + $0x12c] ss:$16 sps:$4 sm:$0xff]   ;;  %v4324_v33 = vld [vmem:[#allocation2 + $0x128] ss:$16 sps:$4 sm:$0xff]   ;;  %v4330_v39 = vld [vmem:[#allocation5 + $0xe0] ss:$16 sps:$4 sm:$0xff]  }
 0x146   :  { %v475_v44 = vpack.c.bf16 %v471_v40, %v471_v40  ;;  %v477_v38 = vpack.c.bf16 %v473_v41, %v473_v41  ;;  %v4997_v46 = vpack.c.bf16 %v470_v42, %v470_v42  ;;  %v4999_v23 = vpack.c.bf16 %v472_v43, %v472_v43  ;;  %v4329_v34 = vld [vmem:[#allocation2 + $0x10c] ss:$16 sps:$4 sm:$0xff]   ;;  %v4327_v35 = vld [vmem:[#allocation2 + $0x108] ss:$16 sps:$4 sm:$0xff]   ;;  %v4335_v40 = vld [vmem:[#allocation5 + $0xc4] ss:$16 sps:$4 sm:$0xff]  }
 0x147   :  { %v4333_v41 = vld [vmem:[#allocation5 + $0xc0] ss:$16 sps:$4 sm:$0xff]   ;;  %v4338_v42 = vld [vmem:[#allocation5 + $0xa4] ss:$16 sps:$4 sm:$0xff]  }
 0x148   :  { %1135 = vmatprep.mubr.bf16.mxu0 %v475_v44  ;;  %3905 = vmatprep.mubr.msk.bf16.mxu1 %vm295_vm3, %v477_v38  ;;  %v4336_v43 = vld [vmem:[#allocation5 + $0xa0] ss:$16 sps:$4 sm:$0xff]  }
 0x149   :  { %1136 = vmatmul.mubr.bf16.vlgmr.msra.gmra.mxu0 %v4997_v46  ;;  %1177 = vmatmul.mubr.bf16.vlgmr.msra.gmra.mxu1 %v4999_v23 }
 0x14a   :  { %1186 = vmatpush1.bf16.msra.mxu1 %v4255_v45  ;;  %1227 = vmatpush1.bf16.msra.mxu0 %v4258_v37  ;;  %v4344_v45 = vld [vmem:[#allocation5 + $0x64] ss:$16 sps:$4 sm:$0xff]   ;;  %v4342_v37 = vld [vmem:[#allocation5 + $0x60] ss:$16 sps:$4 sm:$0xff]  }
 0x14b   :  { %1217 = vmatprep.mubr.bf16.mxu1 %v475_v44  ;;  %3906 = vmatprep.mubr.msk.bf16.mxu0 %vm295_vm3, %v477_v38  ;;  %v4341_v44 = vld [vmem:[#allocation5 + $0x84] ss:$16 sps:$4 sm:$0xff]   ;;  %v4339_v38 = vld [vmem:[#allocation5 + $0x80] ss:$16 sps:$4 sm:$0xff]  }
 0x14c   :  { %1187 = vmatprep.subr.bf16.mxu1 %v4263_v24  ;;  %1228 = vmatprep.subr.bf16.mxu0 %v4266_v47  ;;  %v4350_v24 = vld [vmem:[#allocation5 + $0x24] ss:$16 sps:$4 sm:$0xff]   ;;  %v4348_v47 = vld [vmem:[#allocation5 + $0x20] ss:$16 sps:$4 sm:$0xff]  }
 0x14e   :  { %1188 = vmatpush1.bf16.msra.mxu1 %v4261_v48  ;;  %1229 = vmatpush1.bf16.msra.mxu0 %v4264_v49  ;;  %v4353_v48 = vld [vmem:[#allocation5 + $0x4] ss:$16 sps:$4 sm:$0xff]  }
 0x14f   :  { %1189 = vmatprep.subr.bf16.mxu1 %v4269_v50  ;;  %1230 = vmatprep.subr.bf16.mxu0 %v4272_v51  ;;  %v4356_v49 = vld [vmem:[#allocation5 + $0x2e4] ss:$16 sps:$4 sm:$0xff]   ;;  %v4351_v50 = vld [vmem:[#allocation5] ss:$16 sps:$4 sm:$0xff]  }
 0x150   :  { %v4354_v51 = vld [vmem:[#allocation5 + $0x2e0] ss:$16 sps:$4 sm:$0xff]  }
 0x152   :  { %1190 = vmatpush1.bf16.msra.mxu1 %v4267_v52  ;;  %1231 = vmatpush1.bf16.msra.mxu0 %v4270_v53  ;;  %v4359_v52 = vld [vmem:[#allocation5 + $0x1e4] ss:$16 sps:$4 sm:$0xff]  }
 0x153   :  { %1191 = vmatprep.subr.bf16.mxu1 %v4275_v54  ;;  %1232 = vmatprep.subr.bf16.mxu0 %v4278_v55  ;;  %v4362_v53 = vld [vmem:[#allocation5 + $0x2c4] ss:$16 sps:$4 sm:$0xff]   ;;  %v4357_v54 = vld [vmem:[#allocation5 + $0x1e0] ss:$16 sps:$4 sm:$0xff]  }
 0x154   :  { %v4360_v55 = vld [vmem:[#allocation5 + $0x2c0] ss:$16 sps:$4 sm:$0xff]  }
 0x156   :  { %1192 = vmatpush1.bf16.msra.mxu1 %v4273_v56  ;;  %1233 = vmatpush1.bf16.msra.mxu0 %v4276_v57  ;;  %v4365_v56 = vld [vmem:[#allocation5 + $0x1c4] ss:$16 sps:$4 sm:$0xff]  }
 0x157   :  { %1193 = vmatprep.subr.bf16.mxu1 %v4281_v58  ;;  %1234 = vmatprep.subr.bf16.mxu0 %v4284_v60  ;;  %v4368_v57 = vld [vmem:[#allocation5 + $0x2a4] ss:$16 sps:$4 sm:$0xff]   ;;  %v4363_v58 = vld [vmem:[#allocation5 + $0x1c0] ss:$16 sps:$4 sm:$0xff]  }
 0x158   :  { %v4366_v60 = vld [vmem:[#allocation5 + $0x2a0] ss:$16 sps:$4 sm:$0xff]  }
 0x15a   :  { %1194 = vmatpush1.bf16.msra.mxu1 %v4279_v61  ;;  %1235 = vmatpush1.bf16.msra.mxu0 %v4282_v62  ;;  %v4371_v61 = vld [vmem:[#allocation5 + $0x1a4] ss:$16 sps:$4 sm:$0xff]  }
 0x15b   :  { %1195 = vmatprep.subr.bf16.mxu1 %v4287_v63  ;;  %1236 = vmatprep.subr.bf16.mxu0 %v4290_v4  ;;  %v4374_v62 = vld [vmem:[#allocation5 + $0x284] ss:$16 sps:$4 sm:$0xff]   ;;  %v4369_v63 = vld [vmem:[#allocation5 + $0x1a0] ss:$16 sps:$4 sm:$0xff]  }
 0x15c   :  { %v4372_v4 = vld [vmem:[#allocation5 + $0x280] ss:$16 sps:$4 sm:$0xff]  }
 0x15e   :  { %1196 = vmatpush1.bf16.msra.mxu1 %v4285_v7  ;;  %1237 = vmatpush1.bf16.msra.mxu0 %v4288_v8  ;;  %v4377_v7 = vld [vmem:[#allocation5 + $0x184] ss:$16 sps:$4 sm:$0xff]  }
 0x15f   :  { %1197 = vmatprep.subr.bf16.mxu1 %v4293_v9  ;;  %1238 = vmatprep.subr.bf16.mxu0 %v4296_v10  ;;  %v4380_v8 = vld [vmem:[#allocation5 + $0x264] ss:$16 sps:$4 sm:$0xff]   ;;  %v4375_v9 = vld [vmem:[#allocation5 + $0x180] ss:$16 sps:$4 sm:$0xff]  }
 0x160   :  { %v4378_v10 = vld [vmem:[#allocation5 + $0x260] ss:$16 sps:$4 sm:$0xff]  }
 0x162   :  { %1198 = vmatpush1.bf16.msra.mxu1 %v4291_v11  ;;  %1239 = vmatpush1.bf16.msra.mxu0 %v4294_v12  ;;  %v5010_v11 = vld [vmem:[%s5340_s6] sm:$0xf]  ;;  %v4383_v12 = vld [vmem:[#allocation5 + $0x164] ss:$16 sps:$4 sm:$0xff]  }
 0x163   :  { %1199 = vmatprep.subr.bf16.mxu1 %v4299_v1  ;;  %1240 = vmatprep.subr.bf16.mxu0 %v4302_v13  ;;  %v4386_v1 = vld [vmem:[#allocation5 + $0x244] ss:$16 sps:$4 sm:$0xff]   ;;  %v583_v13 = vrot.slane %v5010_v11, %v4922_v2 }
 0x166   :  { %1200 = vmatpush1.bf16.msra.mxu1 %v4297_v15  ;;  %1241 = vmatpush1.bf16.msra.mxu0 %v4300_v17  ;;  %v4381_v15 = vld [vmem:[#allocation5 + $0x160] ss:$16 sps:$4 sm:$0xff]  }
 0x167   :  { %1201 = vmatprep.subr.bf16.mxu1 %v4305_v18  ;;  %1256 = vmatprep.subr.bf16.mxu0 %v4308_v19  ;;  %v4384_v17 = vld [vmem:[#allocation5 + $0x240] ss:$16 sps:$4 sm:$0xff]   ;;  %v587_v18 = vrot.slane %v5010_v11, %v4931_v5 }
 0x16a   :  { %1202 = vmatpush2.bf16.msra.mxu1 %v4303_v20  ;;  %1257 = vmatpush2.bf16.msra.mxu0 %v4306_v21  ;;  %v4389_v21 = vld [vmem:[#allocation5 + $0x144] ss:$16 sps:$4 sm:$0xff]  }
 0x16b   :  { %1203 = vmatprep.subr.bf16.mxu1 %v4311_v22  ;;  %2106 = vmatprep.subr.bf16.mxu0 %v4332_v36  ;;  %v4392_v22 = vld [vmem:[#allocation5 + $0x224] ss:$16 sps:$4 sm:$0xff]  }
 0x16d   :  { %1259 = vmatmul.mubr.bf16.vlgmr.msra.gmra.mxu0 %v4999_v23  ;;  %v4345_v23 = vld [vmem:[#allocation5 + $0x40] ss:$16 sps:$4 sm:$0xff]  }
 0x16e   :  { %1204 = vmatpush2.bf16.msra.mxu1 %v4309_v25  ;;  %2107 = vmatpush1.bf16.msra.mxu0 %v4330_v39  ;;  %v4393_v39 = vld [vmem:[#allocation5 + $0x120] ss:$16 sps:$4 sm:$0xff]  }
 0x16f   :  { %1205 = vmatprep.subr.bf16.mxu1 %v4314_v26  ;;  %2108 = vmatprep.subr.bf16.mxu0 %v4335_v40  ;;  %v4387_v26 = vld [vmem:[#allocation5 + $0x140] ss:$16 sps:$4 sm:$0xff]  }
 0x170   :  { %v4396_v40 = vld [vmem:[#allocation5 + $0x200] ss:$16 sps:$4 sm:$0xff]  }
 0x172   :  { %1206 = vmatpush2.bf16.msra.mxu1 %v4312_v27  ;;  %2109 = vmatpush1.bf16.msra.mxu0 %v4333_v41  ;;  %v4390_v27 = vld [vmem:[#allocation5 + $0x220] ss:$16 sps:$4 sm:$0xff]  }
 0x173   :  { %1207 = vmatprep.subr.bf16.mxu1 %v4317_v28  ;;  %2110 = vmatprep.subr.bf16.mxu0 %v4338_v42 }
 0x176   :  { %1208 = vmatpush2.bf16.msra.mxu1 %v4315_v29  ;;  %2111 = vmatpush1.bf16.msra.mxu0 %v4336_v43  ;;  %v4399_v43 = vld [vmem:[#allocation5 + $0x100] ss:$16 sps:$4 sm:$0xff]  }
 0x177   :  { %1209 = vmatprep.subr.bf16.mxu1 %v4320_v30  ;;  %2112 = vmatprep.subr.bf16.mxu0 %v4341_v44  ;;  %v4401_v44 = vld [vmem:[#allocation5 + $0x104] ss:$16 sps:$4 sm:$0xff]  }
 0x17a   :  { %1210 = vmatpush2.bf16.msra.mxu1 %v4318_v31  ;;  %2113 = vmatpush1.bf16.msra.mxu0 %v4339_v38 }
 0x17b   :  { %1211 = vmatprep.subr.bf16.mxu1 %v4323_v16  ;;  %2114 = vmatprep.subr.bf16.mxu0 %v4344_v45 }
 0x17e   :  { %1212 = vmatpush2.bf16.msra.mxu1 %v4321_v32  ;;  %2115 = vmatpush1.bf16.msra.mxu0 %v4342_v37 }
 0x17f   :  { %1213 = vmatprep.subr.bf16.mxu1 %v4326_v14  ;;  %v4395_v14 = vld [vmem:[#allocation5 + $0x124] ss:$16 sps:$4 sm:$0xff]  }
 0x182   :  { %1214 = vmatpush2.bf16.msra.mxu1 %v4324_v33  ;;  %v4398_v33 = vld [vmem:[#allocation5 + $0x204] ss:$16 sps:$4 sm:$0xff]  }
 0x183   :  { %1215 = vmatprep.subr.bf16.mxu1 %v4329_v34 }
 0x186   :  { %1216 = vmatpush2.bf16.msra.mxu1 %v4327_v35 }
 0x187   :  { %2147 = vmatprep.subr.bf16.mxu1 %v4356_v49 }
 0x189   :  { %1218 = vmatmul.mubr.bf16.vlgmr.msra.gmra.mxu1 %v4997_v46  ;;  %v4347_v46 = vld [vmem:[#allocation5 + $0x44] ss:$16 sps:$4 sm:$0xff]  }
 0x18a   :  { %2116 = vmatprep.subr.bf16.mxu0 %v4347_v46  ;;  %2148 = vmatpush1.bf16.msra.mxu1 %v4354_v51 }
 0x18b   :  { %2117 = vmatpush1.bf16.msra.mxu0 %v4345_v23  ;;  %2149 = vmatprep.subr.bf16.mxu1 %v4362_v53  ;;  %v4402_v23 = vld [vmem:[#allocation5 + $0x300] ss:$16 sps:$4 sm:$0xff]  }
 0x18c   :  { %2118 = vmatprep.subr.bf16.mxu0 %v4350_v24  ;;  %v4404_v24 = vld [vmem:[#allocation5 + $0x304] ss:$16 sps:$4 sm:$0xff]  }
 0x18e   :  { %2150 = vmatpush1.bf16.msra.mxu1 %v4360_v55  ;;  %v4407_v55 = vld [vmem:[#allocation5 + $0xec] ss:$16 sps:$4 sm:$0xff]  }
 0x18f   :  { %2119 = vmatpush1.bf16.msra.mxu0 %v4348_v47  ;;  %2151 = vmatprep.subr.bf16.mxu1 %v4368_v57 }
 0x190   :  { %2120 = vmatprep.subr.bf16.mxu0 %v4353_v48 }
 0x192   :  { %2152 = vmatpush1.bf16.msra.mxu1 %v4366_v60 }
 0x193   :  { %2121 = vmatpush1.bf16.msra.mxu0 %v4351_v50  ;;  %2153 = vmatprep.subr.bf16.mxu1 %v4374_v62 }
 0x194   :  { %2122 = vmatprep.subr.bf16.mxu0 %v4359_v52 }
 0x196   :  { %2154 = vmatpush1.bf16.msra.mxu1 %v4372_v4 }
 0x197   :  { %2123 = vmatpush2.bf16.msra.mxu0 %v4357_v54  ;;  %2155 = vmatprep.subr.bf16.mxu1 %v4380_v8 }
 0x198   :  { %2124 = vmatprep.subr.bf16.mxu0 %v4365_v56  ;;  %v4410_v56 = vld [vmem:[#allocation5 + $0x2ec] ss:$16 sps:$4 sm:$0xff]  }
 0x19a   :  { %2156 = vmatpush1.bf16.msra.mxu1 %v4378_v10 }
 0x19b   :  { %2125 = vmatpush2.bf16.msra.mxu0 %v4363_v58  ;;  %2157 = vmatprep.subr.bf16.mxu1 %v4386_v1 }
 0x19c   :  { %2126 = vmatprep.subr.bf16.mxu0 %v4371_v61 }
 0x19e   :  { %2158 = vmatpush1.bf16.msra.mxu1 %v4384_v17 }
 0x19f   :  { %2127 = vmatpush2.bf16.msra.mxu0 %v4369_v63  ;;  %2159 = vmatprep.subr.bf16.mxu1 %v4392_v22 }
 0x1a0   :  { %2128 = vmatprep.subr.bf16.mxu0 %v4377_v7 }
 0x1a2   :  { %2160 = vmatpush1.bf16.msra.mxu1 %v4390_v27 }
 0x1a3   :  { %2129 = vmatpush2.bf16.msra.mxu0 %v4375_v9  ;;  %2161 = vmatprep.subr.bf16.mxu1 %v4398_v33 }
 0x1a4   :  { %2130 = vmatprep.subr.bf16.mxu0 %v4383_v12 }
 0x1a6   :  { %2162 = vmatpush1.bf16.msra.mxu1 %v4396_v40 }
 0x1a7   :  { %2131 = vmatpush2.bf16.msra.mxu0 %v4381_v15  ;;  %2177 = vmatprep.subr.bf16.mxu1 %v4404_v24 }
 0x1a8   :  { %2132 = vmatprep.subr.bf16.mxu0 %v4389_v21 }
 0x1aa   :  { %2178 = vmatpush2.bf16.msra.mxu1 %v4402_v23 }
 0x1ab   :  { %2133 = vmatpush2.bf16.msra.mxu0 %v4387_v26  ;;  %2188 = vmatprep.subr.bf16.mxu1 %v4407_v55 }
 0x1ac   :  { %2134 = vmatprep.subr.bf16.mxu0 %v4395_v14 }
 0x1af   :  { %2135 = vmatpush2.bf16.msra.mxu0 %v4393_v39 }
 0x1b0   :  { %2136 = vmatprep.subr.bf16.mxu0 %v4401_v44 }
 0x1b3   :  { %2137 = vmatpush2.bf16.msra.mxu0 %v4399_v43 }
 0x1b4   :  { %2229 = vmatprep.subr.bf16.mxu0 %v4410_v56 }
 0x209   :  { %v1137_v19 = vpop.f32.mrf.mxu0  ;;  %v1178_v20 = vpop.f32.mrf.mxu1 }
 0x20a   :  { %v1138_v25 = vadd.f32 %v1137_v19, %v583_v13 }
 0x20b   :  { %v1139_v28 = vpop.f32.mrf.mxu0  ;;  %v1180_v29 = vpop.f32.mrf.mxu1 }
 0x20c   :  { %v5016_v30 = vadd.f32 %v1178_v20, %v1138_v25  ;;  %v1140_v31 = vadd.f32 %v1139_v28, %v587_v18 }
 0x20d   :  { %v1141_v16 = vpop.f32.mrf.mxu0  ;;  %v1182_v32 = vpop.f32.mrf.mxu1 }
 0x20e   :  { %v1269_v34 = vrot.slane %v5016_v30, 4  ;;  %v1294_v35 = vmul.f32 %v5016_v30, %v5016_v30  ;;  %v5021_v36 = vadd.f32 %v1180_v29, %v1140_v31 }
 0x20f   :  { %v1142_v41 = vpop.f32.mrf.mxu0  ;;  %v1183_v42 = vpop.f32.mrf.mxu1 }
 0x210   :  { %v1270_v38 = vadd.f32 %v1269_v34, %v5016_v30  ;;  %v1298_v45 = vrot.slane %v1294_v35, 4  ;;  %v1275_v37 = vrot.slane %v5021_v36, 4  ;;  %v1295_v46 = vmul.f32 %v5021_v36, %v5021_v36 }
 0x211   :  { %v591_v34 = vrot.slane %v5010_v11, %v4925_v3 }
 0x212   :  { %v1271_v47 = vrot.slane %v1270_v38, 2  ;;  %v1299_v48 = vadd.f32 %v1298_v45, %v1294_v35  ;;  %v1276_v49 = vadd.f32 %v1275_v37, %v5021_v36  ;;  %v1304_v50 = vrot.slane %v1295_v46, 4 }
 0x213   :  { %v595_v35 = vrot.slane %v5010_v11, %v4934_v6 }
 0x214   :  { %v1272_v51 = vadd.f32 %v1271_v47, %v1270_v38  ;;  %v1300_v52 = vrot.slane %v1299_v48, 2  ;;  %v1277_v53 = vrot.slane %v1276_v49, 2  ;;  %v1305_v54 = vadd.f32 %v1304_v50, %v1295_v46 }
 0x216   :  { %v1273_v57 = vrot.slane %v1272_v51, 1  ;;  %v1301_v58 = vadd.f32 %v1300_v52, %v1299_v48  ;;  %v1278_v60 = vadd.f32 %v1277_v53, %v1276_v49  ;;  %v1306_v61 = vrot.slane %v1305_v54, 2 }
 0x218   :  { %v1274_v62 = vadd.f32 %v1273_v57, %v1272_v51  ;;  %v1302_v63 = vrot.slane %v1301_v58, 1  ;;  %v1279_v4 = vrot.slane %v1278_v60, 1  ;;  %v1307_v7 = vadd.f32 %v1306_v61, %v1305_v54 }
 0x21a   :  { %v1303_v8 = vadd.f32 %v1302_v63, %v1301_v58  ;;  %v5028_v9 = vmul.f32 0.125, %v1274_v62  ;;  %v1280_v10 = vadd.f32 %v1279_v4, %v1278_v60  ;;  %v1308_v12 = vrot.slane %v1307_v7, 1 }
 0x21c   :  { %v1327_v1 = vmul.f32 0.125, %v1303_v8  ;;  %v1331_v13 = vmul.f32 %v5028_v9, %v5028_v9  ;;  %v1309_v15 = vadd.f32 %v1308_v12, %v1307_v7  ;;  %v5032_v17 = vmul.f32 0.125, %v1280_v10 }
 0x21e   :  { %v1335_v18 = vsub.f32 %v1327_v1, %v1331_v13  ;;  %v1328_v19 = vmul.f32 0.125, %v1309_v15  ;;  %v1332_v20 = vmul.f32 %v5032_v17, %v5032_v17 }
 0x220   :  { %v1339_v21 = vmax.f32 %v1335_v18, 0.0  ;;  %v1336_v22 = vsub.f32 %v1328_v19, %v1332_v20 }
 0x222   :  { %v1343_v25 = vadd.f32 1e-05, %v1339_v21  ;;  %v1340_v26 = vmax.f32 %v1336_v22, 0.0 }
 0x224   :  { %v1344_v27 = vadd.f32 1e-05, %v1340_v26  ;;  %4663 = vrsqrt.f32 %v1343_v25 }
 0x226   :  { %4665 = vrsqrt.f32 %v1344_v27 }
 0x22d   :  { %v1260_v28 = vpop.f32.mrf.mxu0 }
 0x22f   :  { %v1262_v29 = vpop.f32.mrf.mxu0 }
 0x231   :  { %v1264_v31 = vpop.f32.mrf.mxu0  ;;  %v4664_v16 = vpop.eup %4663 }
 0x233   :  { %v4666_v32 = vpop.eup %4665  ;;  %v1265_v14 = vpop.f32.mrf.mxu0 }
 0x234   :  { %v1355_v33 = vcombine.low %v4664_v16, %v4666_v32 }
 0x249   :  { %v1219_v39 = vpop.f32.mrf.mxu1 }
 0x24a   :  { %v1220_v40 = vadd.f32 %v1219_v39, %v591_v34  ;;  %v1363_v34 = vrot.slane %v1355_v33, %v4970_v59 }
 0x24b   :  { %v1221_v41 = vpop.f32.mrf.mxu1 }
 0x24c   :  { %v5040_v42 = vadd.f32 %v1260_v28, %v1220_v40  ;;  %v1222_v43 = vadd.f32 %v1221_v41, %v595_v35  ;;  %v1267_v40 = vld [vmem:[%s5341_s7] sm:$0xf] }
 0x24d   :  { %v1223_v44 = vpop.f32.mrf.mxu1 }
 0x24e   :  { %v1281_v38 = vrot.slane %v5040_v42, 4  ;;  %v1296_v45 = vmul.f32 %v5040_v42, %v5040_v42  ;;  %v5045_v37 = vadd.f32 %v1262_v29, %v1222_v43 }
 0x24f   :  { %v1224_v46 = vpop.f32.mrf.mxu1 }
 0x250   :  { %v1282_v23 = vadd.f32 %v1281_v38, %v5040_v42  ;;  %v1310_v24 = vrot.slane %v1296_v45, 4  ;;  %v1287_v11 = vsel %vm295_vm3, %v5045_v37, 0.0  ;;  %v1297_v47 = vmul.f32 %v5045_v37, %v5045_v37 }
 0x251   :  { %v1288_v48 = vrot.slane %v1287_v11, 4 }
 0x252   :  { %v1283_v49 = vrot.slane %v1282_v23, 2  ;;  %v1311_v50 = vadd.f32 %v1310_v24, %v1296_v45  ;;  %v1316_v51 = vsel %vm295_vm3, %v1297_v47, 0.0 }
 0x253   :  { %v1289_v52 = vadd.f32 %v1288_v48, %v1287_v11  ;;  %v1317_v53 = vrot.slane %v1316_v51, 4 }
 0x254   :  { %v1284_v54 = vadd.f32 %v1283_v49, %v1282_v23  ;;  %v1312_v55 = vrot.slane %v1311_v50, 2 }
 0x255   :  { %v1290_v56 = vrot.slane %v1289_v52, 2  ;;  %v1318_v57 = vadd.f32 %v1317_v53, %v1316_v51 }
 0x256   :  { %v1285_v58 = vrot.slane %v1284_v54, 1  ;;  %v1313_v60 = vadd.f32 %v1312_v55, %v1311_v50 }
 0x257   :  { %v1291_v61 = vadd.f32 %v1290_v56, %v1289_v52  ;;  %v1319_v62 = vrot.slane %v1318_v57, 2 }
 0x258   :  { %v1286_v63 = vadd.f32 %v1285_v58, %v1284_v54  ;;  %v1314_v4 = vrot.slane %v1313_v60, 1  ;;  %v1268_v54 = vld [vmem:[%s5342_s8] sm:$0xf] }
 0x259   :  { %v1292_v7 = vrot.slane %v1291_v61, 1  ;;  %v1320_v8 = vadd.f32 %v1319_v62, %v1318_v57 }
 0x25a   :  { %v1315_v10 = vadd.f32 %v1314_v4, %v1313_v60  ;;  %v1325_v12 = vmul.f32 0.125, %v1286_v63 }
 0x25b   :  { %v1293_v1 = vadd.f32 %v1292_v7, %v1291_v61  ;;  %v1321_v13 = vrot.slane %v1320_v8, 1 }
 0x25c   :  { %v1329_v15 = vmul.f32 0.125, %v1315_v10  ;;  %v1333_v18 = vmul.f32 %v1325_v12, %v1325_v12 }
 0x25d   :  { %v1322_v19 = vadd.f32 %v1321_v13, %v1320_v8  ;;  %v1326_v20 = vmul.f32 0.125, %v1293_v1  ;;  %v4405_v13 = vld [vmem:[#allocation5 + $0xe8] ss:$16 sps:$4 sm:$0xff]  }
 0x25e   :  { %v1337_v21 = vsub.f32 %v1329_v15, %v1333_v18  ;;  %v4408_v15 = vld [vmem:[#allocation5 + $0x2e8] ss:$16 sps:$4 sm:$0xff]  }
 0x25f   :  { %v1330_v22 = vmul.f32 0.125, %v1322_v19  ;;  %v1334_v25 = vmul.f32 %v1326_v20, %v1326_v20 }
 0x260   :  { %v1341_v26 = vmax.f32 %v1337_v21, 0.0 }
 0x261   :  { %v1338_v27 = vsub.f32 %v1330_v22, %v1334_v25  ;;  %v4413_v22 = vld [vmem:[#allocation5 + $0xcc] ss:$16 sps:$4 sm:$0xff]  }
 0x262   :  { %v1345_v28 = vadd.f32 1e-05, %v1341_v26  ;;  %v4416_v25 = vld [vmem:[#allocation5 + $0x2cc] ss:$16 sps:$4 sm:$0xff]   ;;  %v4411_v26 = vld [vmem:[#allocation5 + $0xc8] ss:$16 sps:$4 sm:$0xff]  }
 0x263   :  { %v1342_v29 = vmax.f32 %v1338_v27, 0.0  ;;  %v4414_v27 = vld [vmem:[#allocation5 + $0x2c8] ss:$16 sps:$4 sm:$0xff]  }
 0x264   :  { %4667 = vrsqrt.f32 %v1345_v28  ;;  %v4419_v28 = vld [vmem:[#allocation5 + $0xac] ss:$16 sps:$4 sm:$0xff]  }
 0x265   :  { %v1346_v31 = vadd.f32 1e-05, %v1342_v29  ;;  %v4422_v29 = vld [vmem:[#allocation5 + $0x2ac] ss:$16 sps:$4 sm:$0xff]  }
 0x267   :  { %4669 = vrsqrt.f32 %v1346_v31  ;;  %v4417_v31 = vld [vmem:[#allocation5 + $0xa8] ss:$16 sps:$4 sm:$0xff]  }
 0x271   :  { %v4668_v16 = vpop.eup %4667 }
 0x274   :  { %v4670_v32 = vpop.eup %4669 }
 0x275   :  { %v1356_v14 = vcombine.low %v4668_v16, %v4670_v32  ;;  %v4420_v16 = vld [vmem:[#allocation5 + $0x2a8] ss:$16 sps:$4 sm:$0xff]   ;;  %v4425_v32 = vld [vmem:[#allocation5 + $0x8c] ss:$16 sps:$4 sm:$0xff]  }
 0x277   :  { %v1370_v35 = vrot.slane %v1356_v14, %v4970_v59  ;;  %v4428_v14 = vld [vmem:[#allocation5 + $0x28c] ss:$16 sps:$4 sm:$0xff]  }
 0x279   :  { %v1371_v39 = vcombine.low %v1363_v34, %v1370_v35  ;;  %v4423_v34 = vld [vmem:[#allocation5 + $0x88] ss:$16 sps:$4 sm:$0xff]  }
 0x27a   :  { %v4426_v35 = vld [vmem:[#allocation5 + $0x288] ss:$16 sps:$4 sm:$0xff]  }
 0x27b   :  { %v1378_v41 = vrot.slane %v1371_v39, %v4970_v59  ;;  %v4431_v39 = vld [vmem:[#allocation5 + $0x6c] ss:$16 sps:$4 sm:$0xff]  }
 0x27d   :  { %v1380_v43 = vmul.f32 %v1378_v41, %v1267_v40  ;;  %v4434_v40 = vld [vmem:[#allocation5 + $0x26c] ss:$16 sps:$4 sm:$0xff]   ;;  %v4429_v41 = vld [vmem:[#allocation5 + $0x68] ss:$16 sps:$4 sm:$0xff]  }
 0x27f   :  { %v1385_v44 = vrot.slane %v1380_v43, %v4922_v2  ;;  %v1389_v38 = vrot.slane %v1380_v43, %v4931_v5  ;;  %v1393_v45 = vrot.slane %v1380_v43, %v4925_v3  ;;  %v1397_v46 = vrot.slane %v1380_v43, %v4934_v6  ;;  %v4432_v43 = vld [vmem:[#allocation5 + $0x268] ss:$16 sps:$4 sm:$0xff]  }
 0x281   :  { %v1402_v33 = vmul.f32 %v1385_v44, %v5028_v9  ;;  %v1403_v23 = vmul.f32 %v1389_v38, %v5032_v17  ;;  %v1404_v24 = vmul.f32 %v1393_v45, %v1325_v12  ;;  %v1405_v11 = vmul.f32 %v1397_v46, %v1326_v20 }
 0x282   :  { %v1437_v47 = vmul.f32 %v1389_v38, %v5021_v36  ;;  %v1436_v48 = vmul.f32 %v1385_v44, %v5016_v30  ;;  %v1439_v55 = vmul.f32 %v1397_v46, %v5045_v37  ;;  %v1438_v36 = vmul.f32 %v1393_v45, %v5040_v42  ;;  %v4437_v44 = vld [vmem:[#allocation5 + $0x4c] ss:$16 sps:$4 sm:$0xff]   ;;  %v4435_v45 = vld [vmem:[#allocation5 + $0x48] ss:$16 sps:$4 sm:$0xff]  }
 0x283   :  { %v1410_v49 = vcombine.low %v1402_v33, %v1403_v23  ;;  %v1411_v50 = vcombine.low %v1404_v24, %v1405_v11  ;;  %v4440_v38 = vld [vmem:[#allocation5 + $0x24c] ss:$16 sps:$4 sm:$0xff]   ;;  %v4438_v46 = vld [vmem:[#allocation5 + $0x248] ss:$16 sps:$4 sm:$0xff]  }
 0x284   :  { %v4443_v33 = vld [vmem:[#allocation5 + $0x2c] ss:$16 sps:$4 sm:$0xff]   ;;  %v4441_v24 = vld [vmem:[#allocation5 + $0x28] ss:$16 sps:$4 sm:$0xff]  }
 0x285   :  { %v1418_v51 = vrot.slane %v1410_v49, %v4970_v59  ;;  %v1425_v52 = vrot.slane %v1411_v50, %v4970_v59  ;;  %v4446_v23 = vld [vmem:[#allocation5 + $0x22c] ss:$16 sps:$4 sm:$0xff]   ;;  %v4444_v11 = vld [vmem:[#allocation5 + $0x228] ss:$16 sps:$4 sm:$0xff]  }
 0x286   :  { %v4447_v49 = vld [vmem:[#allocation5 + $0x8] ss:$16 sps:$4 sm:$0xff]  }
 0x287   :  { %v1426_v53 = vcombine.low %v1418_v51, %v1425_v52  ;;  %v4450_v50 = vld [vmem:[#allocation5 + $0x208] ss:$16 sps:$4 sm:$0xff]   ;;  %v4455_v51 = vld [vmem:[#allocation5 + $0x1ec] ss:$16 sps:$4 sm:$0xff]  }
 0x288   :  { %v4458_v52 = vld [vmem:[#allocation5 + $0x30c] ss:$16 sps:$4 sm:$0xff]  }
 0x289   :  { %v1433_v9 = vrot.slane %v1426_v53, %v4970_v59  ;;  %v4453_v53 = vld [vmem:[#allocation5 + $0x1e8] ss:$16 sps:$4 sm:$0xff]  }
 0x28b   :  { %v1435_v17 = vsub.f32 %v1268_v54, %v1433_v9  ;;  %v4456_v54 = vld [vmem:[#allocation5 + $0x308] ss:$16 sps:$4 sm:$0xff]   ;;  %v4461_v9 = vld [vmem:[#allocation5 + $0x1cc] ss:$16 sps:$4 sm:$0xff]  }
 0x28d   :  { %v1456_v30 = vrot.slane %v1435_v17, %v4934_v6  ;;  %v1448_v56 = vrot.slane %v1435_v17, %v4931_v5  ;;  %v1444_v57 = vrot.slane %v1435_v17, %v4922_v2  ;;  %v1452_v58 = vrot.slane %v1435_v17, %v4925_v3  ;;  %v4459_v17 = vld [vmem:[#allocation5 + $0x1c8] ss:$16 sps:$4 sm:$0xff]  }
 0x28f   :  { %v1464_v60 = vadd.f32 %v1456_v30, %v1439_v55  ;;  %v1462_v61 = vadd.f32 %v1448_v56, %v1437_v47  ;;  %v1461_v62 = vadd.f32 %v1444_v57, %v1436_v48  ;;  %v1463_v63 = vadd.f32 %v1452_v58, %v1438_v36  ;;  %v4449_v47 = vld [vmem:[#allocation5 + $0xc] ss:$16 sps:$4 sm:$0xff]   ;;  %v4462_v36 = vld [vmem:[#allocation5 + $0x1a8] ss:$16 sps:$4 sm:$0xff]  }
 0x290   :  { %v4452_v48 = vld [vmem:[#allocation5 + $0x20c] ss:$16 sps:$4 sm:$0xff]   ;;  %v4465_v56 = vld [vmem:[#allocation5 + $0x188] ss:$16 sps:$4 sm:$0xff]  }
 0x291   :  { %vm1466_vm6 = vcmp.ge.f32.partialorder %v1462_v61, 0.0  ;;  %v1470_v4 = vmul.f32 0.01, %v1462_v61  ;;  %vm1468_vm7 = vcmp.ge.f32.partialorder %v1464_v60, 0.0  ;;  %v1472_v7 = vmul.f32 0.01, %v1464_v60 }
 0x292   :  { %vm1465_vm8 = vcmp.ge.f32.partialorder %v1461_v62, 0.0  ;;  %v1469_v37 = vmul.f32 0.01, %v1461_v62  ;;  %vm1467_vm9 = vcmp.ge.f32.partialorder %v1463_v63, 0.0  ;;  %v1471_v42 = vmul.f32 0.01, %v1463_v63 }
 0x293   :  { %v1474_v8 = vsel %vm1466_vm6, %v1462_v61, %v1470_v4  ;;  %v1476_v10 = vsel %vm1468_vm7, %v1464_v60, %v1472_v7  ;;  %v4464_v55 = vld [vmem:[#allocation5 + $0x1ac] ss:$16 sps:$4 sm:$0xff]   ;;  %v4468_v58 = vld [vmem:[#allocation5 + $0x168] ss:$16 sps:$4 sm:$0xff]  }
 0x294   :  { %v1478_v12 = vpack.c.bf16 %v1474_v8, %v1474_v8  ;;  %v1480_v1 = vpack.c.bf16 %v1476_v10, %v1476_v10  ;;  %v1473_v18 = vsel %vm1465_vm8, %v1461_v62, %v1469_v37  ;;  %v1475_v19 = vsel %vm1467_vm9, %v1463_v63, %v1471_v42  ;;  %v4467_v30 = vld [vmem:[#allocation5 + $0x18c] ss:$16 sps:$4 sm:$0xff]   ;;  %v4471_v61 = vld [vmem:[#allocation5 + $0x148] ss:$16 sps:$4 sm:$0xff]   ;;  %v4482_v37 = vld [vmem:[#allocation7 + $0xe4] ss:$16 sps:$4 sm:$0xff]  }
 0x295   :  { %v5079_v20 = vpack.c.bf16 %v1473_v18, %v1473_v18  ;;  %v5081_v21 = vpack.c.bf16 %v1475_v19, %v1475_v19  ;;  %v4470_v57 = vld [vmem:[#allocation5 + $0x16c] ss:$16 sps:$4 sm:$0xff]   ;;  %v4474_v63 = vld [vmem:[#allocation5 + $0x128] ss:$16 sps:$4 sm:$0xff]   ;;  %v4480_v42 = vld [vmem:[#allocation7 + $0xe0] ss:$16 sps:$4 sm:$0xff]  }
 0x296   :  { %2138 = vmatprep.mubr.bf16.mxu0 %v1478_v12  ;;  %4007 = vmatprep.mubr.msk.bf16.mxu1 %vm295_vm3, %v1480_v1  ;;  %v4473_v60 = vld [vmem:[#allocation5 + $0x14c] ss:$16 sps:$4 sm:$0xff]   ;;  %v4477_v7 = vld [vmem:[#allocation5 + $0x108] ss:$16 sps:$4 sm:$0xff]   ;;  %v4485_v8 = vld [vmem:[#allocation7 + $0xc4] ss:$16 sps:$4 sm:$0xff]  }
 0x297   :  { %2139 = vmatmul.mubr.bf16.vlgmr.msra.gmra.mxu0 %v5079_v20  ;;  %2180 = vmatmul.mubr.bf16.vlgmr.msra.gmra.mxu1 %v5081_v21  ;;  %v4476_v62 = vld [vmem:[#allocation5 + $0x12c] ss:$16 sps:$4 sm:$0xff]   ;;  %v4483_v10 = vld [vmem:[#allocation7 + $0xc0] ss:$16 sps:$4 sm:$0xff]   ;;  %v4494_v18 = vld [vmem:[#allocation7 + $0x64] ss:$16 sps:$4 sm:$0xff]  }
 0x298   :  { %2189 = vmatpush1.bf16.msra.mxu1 %v4405_v13  ;;  %2230 = vmatpush1.bf16.msra.mxu0 %v4408_v15  ;;  %v4479_v4 = vld [vmem:[#allocation5 + $0x10c] ss:$16 sps:$4 sm:$0xff]   ;;  %v4491_v13 = vld [vmem:[#allocation7 + $0x84] ss:$16 sps:$4 sm:$0xff]   ;;  %v4489_v15 = vld [vmem:[#allocation7 + $0x80] ss:$16 sps:$4 sm:$0xff]  }
 0x299   :  { %2220 = vmatprep.mubr.bf16.mxu1 %v1478_v12  ;;  %4008 = vmatprep.mubr.msk.bf16.mxu0 %vm295_vm3, %v1480_v1  ;;  %v4488_v12 = vld [vmem:[#allocation7 + $0xa4] ss:$16 sps:$4 sm:$0xff]   ;;  %v4486_v1 = vld [vmem:[#allocation7 + $0xa0] ss:$16 sps:$4 sm:$0xff]  }
 0x29a   :  { %2190 = vmatprep.subr.bf16.mxu1 %v4413_v22  ;;  %2231 = vmatprep.subr.bf16.mxu0 %v4416_v25  ;;  %v4492_v19 = vld [vmem:[#allocation7 + $0x60] ss:$16 sps:$4 sm:$0xff]   ;;  %v4500_v22 = vld [vmem:[#allocation7 + $0x24] ss:$16 sps:$4 sm:$0xff]  }
 0x29b   :  { %v4498_v25 = vld [vmem:[#allocation7 + $0x20] ss:$16 sps:$4 sm:$0xff]  }
 0x29c   :  { %2191 = vmatpush1.bf16.msra.mxu1 %v4411_v26  ;;  %2232 = vmatpush1.bf16.msra.mxu0 %v4414_v27  ;;  %v4503_v26 = vld [vmem:[#allocation7 + $0x4] ss:$16 sps:$4 sm:$0xff]  }
 0x29d   :  { %2192 = vmatprep.subr.bf16.mxu1 %v4419_v28  ;;  %2233 = vmatprep.subr.bf16.mxu0 %v4422_v29  ;;  %v4506_v27 = vld [vmem:[#allocation7 + $0x2e4] ss:$16 sps:$4 sm:$0xff]   ;;  %v4501_v28 = vld [vmem:[#allocation7] ss:$16 sps:$4 sm:$0xff]  }
 0x29e   :  { %v4504_v29 = vld [vmem:[#allocation7 + $0x2e0] ss:$16 sps:$4 sm:$0xff]  }
 0x2a0   :  { %2193 = vmatpush1.bf16.msra.mxu1 %v4417_v31  ;;  %2234 = vmatpush1.bf16.msra.mxu0 %v4420_v16  ;;  %v4509_v31 = vld [vmem:[#allocation7 + $0x1e4] ss:$16 sps:$4 sm:$0xff]  }
 0x2a1   :  { %2194 = vmatprep.subr.bf16.mxu1 %v4425_v32  ;;  %2235 = vmatprep.subr.bf16.mxu0 %v4428_v14  ;;  %v4512_v16 = vld [vmem:[#allocation7 + $0x2c4] ss:$16 sps:$4 sm:$0xff]   ;;  %v4507_v32 = vld [vmem:[#allocation7 + $0x1e0] ss:$16 sps:$4 sm:$0xff]  }
 0x2a2   :  { %v4510_v14 = vld [vmem:[#allocation7 + $0x2c0] ss:$16 sps:$4 sm:$0xff]  }
 0x2a4   :  { %2195 = vmatpush1.bf16.msra.mxu1 %v4423_v34  ;;  %2236 = vmatpush1.bf16.msra.mxu0 %v4426_v35  ;;  %v4515_v34 = vld [vmem:[#allocation7 + $0x1c4] ss:$16 sps:$4 sm:$0xff]  }
 0x2a5   :  { %2196 = vmatprep.subr.bf16.mxu1 %v4431_v39  ;;  %2237 = vmatprep.subr.bf16.mxu0 %v4434_v40  ;;  %v4518_v35 = vld [vmem:[#allocation7 + $0x2a4] ss:$16 sps:$4 sm:$0xff]   ;;  %v4513_v39 = vld [vmem:[#allocation7 + $0x1c0] ss:$16 sps:$4 sm:$0xff]  }
 0x2a6   :  { %v4516_v40 = vld [vmem:[#allocation7 + $0x2a0] ss:$16 sps:$4 sm:$0xff]  }
 0x2a8   :  { %2197 = vmatpush1.bf16.msra.mxu1 %v4429_v41  ;;  %2238 = vmatpush1.bf16.msra.mxu0 %v4432_v43  ;;  %v4521_v41 = vld [vmem:[#allocation7 + $0x1a4] ss:$16 sps:$4 sm:$0xff]  }
 0x2a9   :  { %2198 = vmatprep.subr.bf16.mxu1 %v4437_v44  ;;  %2239 = vmatprep.subr.bf16.mxu0 %v4440_v38  ;;  %v4524_v43 = vld [vmem:[#allocation7 + $0x284] ss:$16 sps:$4 sm:$0xff]   ;;  %v4519_v44 = vld [vmem:[#allocation7 + $0x1a0] ss:$16 sps:$4 sm:$0xff]  }
 0x2aa   :  { %v4522_v38 = vld [vmem:[#allocation7 + $0x280] ss:$16 sps:$4 sm:$0xff]  }
 0x2ac   :  { %2199 = vmatpush1.bf16.msra.mxu1 %v4435_v45  ;;  %2240 = vmatpush1.bf16.msra.mxu0 %v4438_v46  ;;  %v4527_v45 = vld [vmem:[#allocation7 + $0x184] ss:$16 sps:$4 sm:$0xff]  }
 0x2ad   :  { %2200 = vmatprep.subr.bf16.mxu1 %v4443_v33  ;;  %2241 = vmatprep.subr.bf16.mxu0 %v4446_v23  ;;  %v4530_v46 = vld [vmem:[#allocation7 + $0x264] ss:$16 sps:$4 sm:$0xff]   ;;  %v4525_v33 = vld [vmem:[#allocation7 + $0x180] ss:$16 sps:$4 sm:$0xff]  }
 0x2ae   :  { %v4528_v23 = vld [vmem:[#allocation7 + $0x260] ss:$16 sps:$4 sm:$0xff]  }
 0x2b0   :  { %2201 = vmatpush1.bf16.msra.mxu1 %v4441_v24  ;;  %2242 = vmatpush1.bf16.msra.mxu0 %v4444_v11  ;;  %v5092_v24 = vld [vmem:[%s5344_s10] sm:$0xf]  ;;  %v4533_v11 = vld [vmem:[#allocation7 + $0x164] ss:$16 sps:$4 sm:$0xff]  }
 0x2b1   :  { %2202 = vmatprep.subr.bf16.mxu1 %v4449_v47  ;;  %2243 = vmatprep.subr.bf16.mxu0 %v4452_v48  ;;  %v4536_v47 = vld [vmem:[#allocation7 + $0x244] ss:$16 sps:$4 sm:$0xff]   ;;  %v1586_v48 = vrot.slane %v5092_v24, %v4922_v2 }
 0x2b4   :  { %2203 = vmatpush1.bf16.msra.mxu1 %v4447_v49  ;;  %2244 = vmatpush1.bf16.msra.mxu0 %v4450_v50  ;;  %v4531_v49 = vld [vmem:[#allocation7 + $0x160] ss:$16 sps:$4 sm:$0xff]  }
 0x2b5   :  { %2204 = vmatprep.subr.bf16.mxu1 %v4455_v51  ;;  %2259 = vmatprep.subr.bf16.mxu0 %v4458_v52  ;;  %v4534_v50 = vld [vmem:[#allocation7 + $0x240] ss:$16 sps:$4 sm:$0xff]   ;;  %v1590_v51 = vrot.slane %v5092_v24, %v4931_v5 }
 0x2b8   :  { %2205 = vmatpush2.bf16.msra.mxu1 %v4453_v53  ;;  %2260 = vmatpush2.bf16.msra.mxu0 %v4456_v54  ;;  %v4539_v54 = vld [vmem:[#allocation7 + $0x144] ss:$16 sps:$4 sm:$0xff]  }
 0x2b9   :  { %2206 = vmatprep.subr.bf16.mxu1 %v4461_v9  ;;  %3109 = vmatprep.subr.bf16.mxu0 %v4482_v37  ;;  %v4542_v9 = vld [vmem:[#allocation7 + $0x224] ss:$16 sps:$4 sm:$0xff]  }
 0x2bb   :  { %2262 = vmatmul.mubr.bf16.vlgmr.msra.gmra.mxu0 %v5081_v21  ;;  %v4495_v21 = vld [vmem:[#allocation7 + $0x40] ss:$16 sps:$4 sm:$0xff]  }
 0x2bc   :  { %2207 = vmatpush2.bf16.msra.mxu1 %v4459_v17  ;;  %3110 = vmatpush1.bf16.msra.mxu0 %v4480_v42  ;;  %v4543_v42 = vld [vmem:[#allocation7 + $0x120] ss:$16 sps:$4 sm:$0xff]  }
 0x2bd   :  { %2208 = vmatprep.subr.bf16.mxu1 %v4464_v55  ;;  %3111 = vmatprep.subr.bf16.mxu0 %v4485_v8  ;;  %v4537_v55 = vld [vmem:[#allocation7 + $0x140] ss:$16 sps:$4 sm:$0xff]  }
 0x2be   :  { %v4546_v8 = vld [vmem:[#allocation7 + $0x200] ss:$16 sps:$4 sm:$0xff]  }
 0x2c0   :  { %2209 = vmatpush2.bf16.msra.mxu1 %v4462_v36  ;;  %3112 = vmatpush1.bf16.msra.mxu0 %v4483_v10  ;;  %v4540_v36 = vld [vmem:[#allocation7 + $0x220] ss:$16 sps:$4 sm:$0xff]  }
 0x2c1   :  { %2210 = vmatprep.subr.bf16.mxu1 %v4467_v30  ;;  %3113 = vmatprep.subr.bf16.mxu0 %v4488_v12 }
 0x2c4   :  { %2211 = vmatpush2.bf16.msra.mxu1 %v4465_v56  ;;  %3114 = vmatpush1.bf16.msra.mxu0 %v4486_v1  ;;  %v4549_v1 = vld [vmem:[#allocation7 + $0x100] ss:$16 sps:$4 sm:$0xff]  }
 0x2c5   :  { %2212 = vmatprep.subr.bf16.mxu1 %v4470_v57  ;;  %3115 = vmatprep.subr.bf16.mxu0 %v4491_v13  ;;  %v4551_v13 = vld [vmem:[#allocation7 + $0x104] ss:$16 sps:$4 sm:$0xff]  }
 0x2c8   :  { %2213 = vmatpush2.bf16.msra.mxu1 %v4468_v58  ;;  %3116 = vmatpush1.bf16.msra.mxu0 %v4489_v15 }
 0x2c9   :  { %2214 = vmatprep.subr.bf16.mxu1 %v4473_v60  ;;  %3117 = vmatprep.subr.bf16.mxu0 %v4494_v18 }
 0x2cc   :  { %2215 = vmatpush2.bf16.msra.mxu1 %v4471_v61  ;;  %3118 = vmatpush1.bf16.msra.mxu0 %v4492_v19 }
 0x2cd   :  { %2216 = vmatprep.subr.bf16.mxu1 %v4476_v62  ;;  %v4545_v62 = vld [vmem:[#allocation7 + $0x124] ss:$16 sps:$4 sm:$0xff]  }
 0x2d0   :  { %2217 = vmatpush2.bf16.msra.mxu1 %v4474_v63  ;;  %v4548_v63 = vld [vmem:[#allocation7 + $0x204] ss:$16 sps:$4 sm:$0xff]  }
 0x2d1   :  { %2218 = vmatprep.subr.bf16.mxu1 %v4479_v4 }
 0x2d4   :  { %2219 = vmatpush2.bf16.msra.mxu1 %v4477_v7 }
 0x2d5   :  { %3150 = vmatprep.subr.bf16.mxu1 %v4506_v27 }
 0x2d7   :  { %2221 = vmatmul.mubr.bf16.vlgmr.msra.gmra.mxu1 %v5079_v20  ;;  %v4497_v20 = vld [vmem:[#allocation7 + $0x44] ss:$16 sps:$4 sm:$0xff]  }
 0x2d8   :  { %3119 = vmatprep.subr.bf16.mxu0 %v4497_v20  ;;  %3151 = vmatpush1.bf16.msra.mxu1 %v4504_v29 }
 0x2d9   :  { %3120 = vmatpush1.bf16.msra.mxu0 %v4495_v21  ;;  %3152 = vmatprep.subr.bf16.mxu1 %v4512_v16  ;;  %v4552_v21 = vld [vmem:[#allocation7 + $0x300] ss:$16 sps:$4 sm:$0xff]  }
 0x2da   :  { %3121 = vmatprep.subr.bf16.mxu0 %v4500_v22  ;;  %v4554_v22 = vld [vmem:[#allocation7 + $0x304] ss:$16 sps:$4 sm:$0xff]  }
 0x2dc   :  { %3153 = vmatpush1.bf16.msra.mxu1 %v4510_v14  ;;  %v4557_v14 = vld [vmem:[#allocation7 + $0xec] ss:$16 sps:$4 sm:$0xff]  }
 0x2dd   :  { %3122 = vmatpush1.bf16.msra.mxu0 %v4498_v25  ;;  %3154 = vmatprep.subr.bf16.mxu1 %v4518_v35 }
 0x2de   :  { %3123 = vmatprep.subr.bf16.mxu0 %v4503_v26 }
 0x2e0   :  { %3155 = vmatpush1.bf16.msra.mxu1 %v4516_v40 }
 0x2e1   :  { %3124 = vmatpush1.bf16.msra.mxu0 %v4501_v28  ;;  %3156 = vmatprep.subr.bf16.mxu1 %v4524_v43 }
 0x2e2   :  { %3125 = vmatprep.subr.bf16.mxu0 %v4509_v31 }
 0x2e4   :  { %3157 = vmatpush1.bf16.msra.mxu1 %v4522_v38 }
 0x2e5   :  { %3126 = vmatpush2.bf16.msra.mxu0 %v4507_v32  ;;  %3158 = vmatprep.subr.bf16.mxu1 %v4530_v46 }
 0x2e6   :  { %3127 = vmatprep.subr.bf16.mxu0 %v4515_v34  ;;  %v4560_v34 = vld [vmem:[#allocation7 + $0x2ec] ss:$16 sps:$4 sm:$0xff]  }
 0x2e8   :  { %3159 = vmatpush1.bf16.msra.mxu1 %v4528_v23 }
 0x2e9   :  { %3128 = vmatpush2.bf16.msra.mxu0 %v4513_v39  ;;  %3160 = vmatprep.subr.bf16.mxu1 %v4536_v47 }
 0x2ea   :  { %3129 = vmatprep.subr.bf16.mxu0 %v4521_v41 }
 0x2ec   :  { %3161 = vmatpush1.bf16.msra.mxu1 %v4534_v50 }
 0x2ed   :  { %3130 = vmatpush2.bf16.msra.mxu0 %v4519_v44  ;;  %3162 = vmatprep.subr.bf16.mxu1 %v4542_v9 }
 0x2ee   :  { %3131 = vmatprep.subr.bf16.mxu0 %v4527_v45 }
 0x2f0   :  { %3163 = vmatpush1.bf16.msra.mxu1 %v4540_v36 }
 0x2f1   :  { %3132 = vmatpush2.bf16.msra.mxu0 %v4525_v33  ;;  %3164 = vmatprep.subr.bf16.mxu1 %v4548_v63 }
 0x2f2   :  { %3133 = vmatprep.subr.bf16.mxu0 %v4533_v11 }
 0x2f4   :  { %3165 = vmatpush1.bf16.msra.mxu1 %v4546_v8 }
 0x2f5   :  { %3134 = vmatpush2.bf16.msra.mxu0 %v4531_v49  ;;  %3180 = vmatprep.subr.bf16.mxu1 %v4554_v22 }
 0x2f6   :  { %3135 = vmatprep.subr.bf16.mxu0 %v4539_v54 }
 0x2f8   :  { %3181 = vmatpush2.bf16.msra.mxu1 %v4552_v21 }
 0x2f9   :  { %3136 = vmatpush2.bf16.msra.mxu0 %v4537_v55  ;;  %3191 = vmatprep.subr.bf16.mxu1 %v4557_v14 }
 0x2fa   :  { %3137 = vmatprep.subr.bf16.mxu0 %v4545_v62 }
 0x2fd   :  { %3138 = vmatpush2.bf16.msra.mxu0 %v4543_v42 }
 0x2fe   :  { %3139 = vmatprep.subr.bf16.mxu0 %v4551_v13 }
 0x301   :  { %3140 = vmatpush2.bf16.msra.mxu0 %v4549_v1 }
 0x302   :  { %3232 = vmatprep.subr.bf16.mxu0 %v4560_v34 }
 0x357   :  { %v2140_v52 = vpop.f32.mrf.mxu0  ;;  %v2181_v53 = vpop.f32.mrf.mxu1 }
 0x358   :  { %v2141_v17 = vadd.f32 %v2140_v52, %v1586_v48 }
 0x359   :  { %v2142_v30 = vpop.f32.mrf.mxu0  ;;  %v2183_v56 = vpop.f32.mrf.mxu1 }
 0x35a   :  { %v5098_v57 = vadd.f32 %v2181_v53, %v2141_v17  ;;  %v2143_v58 = vadd.f32 %v2142_v30, %v1590_v51 }
 0x35b   :  { %v2144_v60 = vpop.f32.mrf.mxu0  ;;  %v2185_v61 = vpop.f32.mrf.mxu1 }
 0x35c   :  { %v2272_v4 = vrot.slane %v5098_v57, 4  ;;  %v2297_v7 = vmul.f32 %v5098_v57, %v5098_v57  ;;  %v5103_v37 = vadd.f32 %v2183_v56, %v2143_v58 }
 0x35d   :  { %v2145_v10 = vpop.f32.mrf.mxu0  ;;  %v2186_v12 = vpop.f32.mrf.mxu1 }
 0x35e   :  { %v2273_v15 = vadd.f32 %v2272_v4, %v5098_v57  ;;  %v2301_v18 = vrot.slane %v2297_v7, 4  ;;  %v2278_v19 = vrot.slane %v5103_v37, 4  ;;  %v2298_v20 = vmul.f32 %v5103_v37, %v5103_v37 }
 0x35f   :  { %v1594_v4 = vrot.slane %v5092_v24, %v4925_v3 }
 0x360   :  { %v2274_v25 = vrot.slane %v2273_v15, 2  ;;  %v2302_v26 = vadd.f32 %v2301_v18, %v2297_v7  ;;  %v2279_v27 = vadd.f32 %v2278_v19, %v5103_v37  ;;  %v2307_v28 = vrot.slane %v2298_v20, 4 }
 0x361   :  { %v1598_v7 = vrot.slane %v5092_v24, %v4934_v6 }
 0x362   :  { %v2275_v29 = vadd.f32 %v2274_v25, %v2273_v15  ;;  %v2303_v31 = vrot.slane %v2302_v26, 2  ;;  %v2280_v16 = vrot.slane %v2279_v27, 2  ;;  %v2308_v32 = vadd.f32 %v2307_v28, %v2298_v20 }
 0x364   :  { %v2276_v35 = vrot.slane %v2275_v29, 1  ;;  %v2304_v39 = vadd.f32 %v2303_v31, %v2302_v26  ;;  %v2281_v40 = vadd.f32 %v2280_v16, %v2279_v27  ;;  %v2309_v41 = vrot.slane %v2308_v32, 2 }
 0x366   :  { %v2277_v43 = vadd.f32 %v2276_v35, %v2275_v29  ;;  %v2305_v44 = vrot.slane %v2304_v39, 1  ;;  %v2282_v38 = vrot.slane %v2281_v40, 1  ;;  %v2310_v45 = vadd.f32 %v2309_v41, %v2308_v32 }
 0x368   :  { %v2306_v46 = vadd.f32 %v2305_v44, %v2304_v39  ;;  %v5110_v33 = vmul.f32 0.125, %v2277_v43  ;;  %v2283_v23 = vadd.f32 %v2282_v38, %v2281_v40  ;;  %v2311_v11 = vrot.slane %v2310_v45, 1 }
 0x36a   :  { %v2330_v47 = vmul.f32 0.125, %v2306_v46  ;;  %v2334_v48 = vmul.f32 %v5110_v33, %v5110_v33  ;;  %v2312_v49 = vadd.f32 %v2311_v11, %v2310_v45  ;;  %v5114_v50 = vmul.f32 0.125, %v2283_v23 }
 0x36c   :  { %v2338_v51 = vsub.f32 %v2330_v47, %v2334_v48  ;;  %v2331_v52 = vmul.f32 0.125, %v2312_v49  ;;  %v2335_v53 = vmul.f32 %v5114_v50, %v5114_v50 }
 0x36e   :  { %v2342_v54 = vmax.f32 %v2338_v51, 0.0  ;;  %v2339_v9 = vsub.f32 %v2331_v52, %v2335_v53 }
 0x370   :  { %v2346_v17 = vadd.f32 1e-05, %v2342_v54  ;;  %v2343_v55 = vmax.f32 %v2339_v9, 0.0 }
 0x372   :  { %v2347_v36 = vadd.f32 1e-05, %v2343_v55  ;;  %4671 = vrsqrt.f32 %v2346_v17 }
 0x374   :  { %4673 = vrsqrt.f32 %v2347_v36 }
 0x37b   :  { %v2263_v30 = vpop.f32.mrf.mxu0 }
 0x37d   :  { %v2265_v56 = vpop.f32.mrf.mxu0 }
 0x37f   :  { %v2267_v58 = vpop.f32.mrf.mxu0  ;;  %v4672_v60 = vpop.eup %4671 }
 0x381   :  { %v4674_v61 = vpop.eup %4673  ;;  %v2268_v62 = vpop.f32.mrf.mxu0 }
 0x382   :  { %v2358_v63 = vcombine.low %v4672_v60, %v4674_v61 }
 0x397   :  { %v2222_v42 = vpop.f32.mrf.mxu1 }
 0x398   :  { %v2223_v8 = vadd.f32 %v2222_v42, %v1594_v4  ;;  %v2366_v4 = vrot.slane %v2358_v63, %v4970_v59 }
 0x399   :  { %v2224_v10 = vpop.f32.mrf.mxu1 }
 0x39a   :  { %v5122_v12 = vadd.f32 %v2263_v30, %v2223_v8  ;;  %v2225_v1 = vadd.f32 %v2224_v10, %v1598_v7  ;;  %v2270_v8 = vld [vmem:[%s5345_s11] sm:$0xf] }
 0x39b   :  { %v2226_v13 = vpop.f32.mrf.mxu1 }
 0x39c   :  { %v2284_v15 = vrot.slane %v5122_v12, 4  ;;  %v2299_v18 = vmul.f32 %v5122_v12, %v5122_v12  ;;  %v5127_v19 = vadd.f32 %v2265_v56, %v2225_v1 }
 0x39d   :  { %v2227_v20 = vpop.f32.mrf.mxu1 }
 0x39e   :  { %v2285_v21 = vadd.f32 %v2284_v15, %v5122_v12  ;;  %v2313_v22 = vrot.slane %v2299_v18, 4  ;;  %v2290_v24 = vsel %vm295_vm3, %v5127_v19, 0.0  ;;  %v2300_v25 = vmul.f32 %v5127_v19, %v5127_v19 }
 0x39f   :  { %v2291_v26 = vrot.slane %v2290_v24, 4 }
 0x3a0   :  { %v2286_v27 = vrot.slane %v2285_v21, 2  ;;  %v2314_v28 = vadd.f32 %v2313_v22, %v2299_v18  ;;  %v2319_v29 = vsel %vm295_vm3, %v2300_v25, 0.0 }
 0x3a1   :  { %v2292_v31 = vadd.f32 %v2291_v26, %v2290_v24  ;;  %v2320_v16 = vrot.slane %v2319_v29, 4 }
 0x3a2   :  { %v2287_v32 = vadd.f32 %v2286_v27, %v2285_v21  ;;  %v2315_v14 = vrot.slane %v2314_v28, 2 }
 0x3a3   :  { %v2293_v34 = vrot.slane %v2292_v31, 2  ;;  %v2321_v35 = vadd.f32 %v2320_v16, %v2319_v29 }
 0x3a4   :  { %v2288_v39 = vrot.slane %v2287_v32, 1  ;;  %v2316_v40 = vadd.f32 %v2315_v14, %v2314_v28 }
 0x3a5   :  { %v2294_v41 = vadd.f32 %v2293_v34, %v2292_v31  ;;  %v2322_v43 = vrot.slane %v2321_v35, 2 }
 0x3a6   :  { %v2289_v44 = vadd.f32 %v2288_v39, %v2287_v32  ;;  %v2317_v38 = vrot.slane %v2316_v40, 1  ;;  %v2271_v32 = vld [vmem:[%s5346_s12] sm:$0xf] }
 0x3a7   :  { %v2295_v45 = vrot.slane %v2294_v41, 1  ;;  %v2323_v46 = vadd.f32 %v2322_v43, %v2321_v35 }
 0x3a8   :  { %v2318_v23 = vadd.f32 %v2317_v38, %v2316_v40  ;;  %v2328_v11 = vmul.f32 0.125, %v2289_v44 }
 0x3a9   :  { %v2296_v47 = vadd.f32 %v2295_v45, %v2294_v41  ;;  %v2324_v48 = vrot.slane %v2323_v46, 1 }
 0x3aa   :  { %v2332_v49 = vmul.f32 0.125, %v2318_v23  ;;  %v2336_v51 = vmul.f32 %v2328_v11, %v2328_v11 }
 0x3ab   :  { %v2325_v52 = vadd.f32 %v2324_v48, %v2323_v46  ;;  %v2329_v53 = vmul.f32 0.125, %v2296_v47  ;;  %v4555_v48 = vld [vmem:[#allocation7 + $0xe8] ss:$16 sps:$4 sm:$0xff]  }
 0x3ac   :  { %v2340_v54 = vsub.f32 %v2332_v49, %v2336_v51  ;;  %v4558_v49 = vld [vmem:[#allocation7 + $0x2e8] ss:$16 sps:$4 sm:$0xff]  }
 0x3ad   :  { %v2333_v9 = vmul.f32 0.125, %v2325_v52  ;;  %v2337_v17 = vmul.f32 %v2329_v53, %v2329_v53 }
 0x3ae   :  { %v2344_v55 = vmax.f32 %v2340_v54, 0.0 }
 0x3af   :  { %v2341_v36 = vsub.f32 %v2333_v9, %v2337_v17  ;;  %v4563_v9 = vld [vmem:[#allocation7 + $0xcc] ss:$16 sps:$4 sm:$0xff]  }
 0x3b0   :  { %v2348_v30 = vadd.f32 1e-05, %v2344_v55  ;;  %v4566_v17 = vld [vmem:[#allocation7 + $0x2cc] ss:$16 sps:$4 sm:$0xff]   ;;  %v4561_v55 = vld [vmem:[#allocation7 + $0xc8] ss:$16 sps:$4 sm:$0xff]  }
 0x3b1   :  { %v2345_v56 = vmax.f32 %v2341_v36, 0.0  ;;  %v4564_v36 = vld [vmem:[#allocation7 + $0x2c8] ss:$16 sps:$4 sm:$0xff]  }
 0x3b2   :  { %4675 = vrsqrt.f32 %v2348_v30  ;;  %v4569_v30 = vld [vmem:[#allocation7 + $0xac] ss:$16 sps:$4 sm:$0xff]  }
 0x3b3   :  { %v2349_v58 = vadd.f32 1e-05, %v2345_v56  ;;  %v4572_v56 = vld [vmem:[#allocation7 + $0x2ac] ss:$16 sps:$4 sm:$0xff]  }
 0x3b5   :  { %4677 = vrsqrt.f32 %v2349_v58  ;;  %v4567_v58 = vld [vmem:[#allocation7 + $0xa8] ss:$16 sps:$4 sm:$0xff]  }
 0x3bf   :  { %v4676_v60 = vpop.eup %4675 }
 0x3c2   :  { %v4678_v61 = vpop.eup %4677 }
 0x3c3   :  { %v2359_v62 = vcombine.low %v4676_v60, %v4678_v61  ;;  %v4570_v60 = vld [vmem:[#allocation7 + $0x2a8] ss:$16 sps:$4 sm:$0xff]   ;;  %v4575_v61 = vld [vmem:[#allocation7 + $0x8c] ss:$16 sps:$4 sm:$0xff]  }
 0x3c5   :  { %v2373_v7 = vrot.slane %v2359_v62, %v4970_v59  ;;  %v4578_v62 = vld [vmem:[#allocation7 + $0x28c] ss:$16 sps:$4 sm:$0xff]  }
 0x3c7   :  { %v2374_v42 = vcombine.low %v2366_v4, %v2373_v7  ;;  %v4573_v4 = vld [vmem:[#allocation7 + $0x88] ss:$16 sps:$4 sm:$0xff]  }
 0x3c8   :  { %v4576_v7 = vld [vmem:[#allocation7 + $0x288] ss:$16 sps:$4 sm:$0xff]  }
 0x3c9   :  { %v2381_v10 = vrot.slane %v2374_v42, %v4970_v59  ;;  %v4581_v42 = vld [vmem:[#allocation7 + $0x6c] ss:$16 sps:$4 sm:$0xff]  }
 0x3cb   :  { %v2383_v1 = vmul.f32 %v2381_v10, %v2270_v8  ;;  %v4584_v8 = vld [vmem:[#allocation7 + $0x26c] ss:$16 sps:$4 sm:$0xff]   ;;  %v4579_v10 = vld [vmem:[#allocation7 + $0x68] ss:$16 sps:$4 sm:$0xff]  }
 0x3cd   :  { %v2388_v13 = vrot.slane %v2383_v1, %v4922_v2  ;;  %v2392_v15 = vrot.slane %v2383_v1, %v4931_v5  ;;  %v2396_v18 = vrot.slane %v2383_v1, %v4925_v3  ;;  %v2400_v20 = vrot.slane %v2383_v1, %v4934_v6  ;;  %v4582_v1 = vld [vmem:[#allocation7 + $0x268] ss:$16 sps:$4 sm:$0xff]  }
 0x3cf   :  { %v2405_v63 = vmul.f32 %v2388_v13, %v5110_v33  ;;  %v2406_v21 = vmul.f32 %v2392_v15, %v5114_v50  ;;  %v2407_v22 = vmul.f32 %v2396_v18, %v2328_v11  ;;  %v2408_v24 = vmul.f32 %v2400_v20, %v2329_v53 }
 0x3d0   :  { %v2440_v25 = vmul.f32 %v2392_v15, %v5103_v37  ;;  %v2439_v26 = vmul.f32 %v2388_v13, %v5098_v57  ;;  %v2442_v14 = vmul.f32 %v2400_v20, %v5127_v19  ;;  %v2441_v37 = vmul.f32 %v2396_v18, %v5122_v12  ;;  %v4587_v13 = vld [vmem:[#allocation7 + $0x4c] ss:$16 sps:$4 sm:$0xff]   ;;  %v4585_v18 = vld [vmem:[#allocation7 + $0x48] ss:$16 sps:$4 sm:$0xff]  }
 0x3d1   :  { %v2413_v27 = vcombine.low %v2405_v63, %v2406_v21  ;;  %v2414_v28 = vcombine.low %v2407_v22, %v2408_v24  ;;  %v4590_v15 = vld [vmem:[#allocation7 + $0x24c] ss:$16 sps:$4 sm:$0xff]   ;;  %v4588_v20 = vld [vmem:[#allocation7 + $0x248] ss:$16 sps:$4 sm:$0xff]  }
 0x3d2   :  { %v4593_v63 = vld [vmem:[#allocation7 + $0x2c] ss:$16 sps:$4 sm:$0xff]   ;;  %v4591_v22 = vld [vmem:[#allocation7 + $0x28] ss:$16 sps:$4 sm:$0xff]  }
 0x3d3   :  { %v2421_v29 = vrot.slane %v2413_v27, %v4970_v59  ;;  %v2428_v31 = vrot.slane %v2414_v28, %v4970_v59  ;;  %v4596_v21 = vld [vmem:[#allocation7 + $0x22c] ss:$16 sps:$4 sm:$0xff]   ;;  %v4594_v24 = vld [vmem:[#allocation7 + $0x228] ss:$16 sps:$4 sm:$0xff]  }
 0x3d4   :  { %v4597_v27 = vld [vmem:[#allocation7 + $0x8] ss:$16 sps:$4 sm:$0xff]  }
 0x3d5   :  { %v2429_v16 = vcombine.low %v2421_v29, %v2428_v31  ;;  %v4600_v28 = vld [vmem:[#allocation7 + $0x208] ss:$16 sps:$4 sm:$0xff]   ;;  %v4605_v29 = vld [vmem:[#allocation7 + $0x1ec] ss:$16 sps:$4 sm:$0xff]  }
 0x3d6   :  { %v4608_v31 = vld [vmem:[#allocation7 + $0x30c] ss:$16 sps:$4 sm:$0xff]  }
 0x3d7   :  { %v2436_v33 = vrot.slane %v2429_v16, %v4970_v59  ;;  %v4603_v16 = vld [vmem:[#allocation7 + $0x1e8] ss:$16 sps:$4 sm:$0xff]  }
 0x3d9   :  { %v2438_v50 = vsub.f32 %v2271_v32, %v2436_v33  ;;  %v4606_v32 = vld [vmem:[#allocation7 + $0x308] ss:$16 sps:$4 sm:$0xff]   ;;  %v4611_v33 = vld [vmem:[#allocation7 + $0x1cc] ss:$16 sps:$4 sm:$0xff]  }
 0x3db   :  { %v2459_v57 = vrot.slane %v2438_v50, %v4934_v6  ;;  %v2451_v34 = vrot.slane %v2438_v50, %v4931_v5  ;;  %v2447_v35 = vrot.slane %v2438_v50, %v4922_v2  ;;  %v2455_v39 = vrot.slane %v2438_v50, %v4925_v3  ;;  %v4609_v50 = vld [vmem:[#allocation7 + $0x1c8] ss:$16 sps:$4 sm:$0xff]  }
 0x3dd   :  { %v2467_v40 = vadd.f32 %v2459_v57, %v2442_v14  ;;  %v2465_v41 = vadd.f32 %v2451_v34, %v2440_v25  ;;  %v2464_v43 = vadd.f32 %v2447_v35, %v2439_v26  ;;  %v2466_v44 = vadd.f32 %v2455_v39, %v2441_v37  ;;  %v4599_v25 = vld [vmem:[#allocation7 + $0xc] ss:$16 sps:$4 sm:$0xff]   ;;  %v4612_v37 = vld [vmem:[#allocation7 + $0x1a8] ss:$16 sps:$4 sm:$0xff]  }
 0x3de   :  { %v4602_v26 = vld [vmem:[#allocation7 + $0x20c] ss:$16 sps:$4 sm:$0xff]   ;;  %v4615_v34 = vld [vmem:[#allocation7 + $0x188] ss:$16 sps:$4 sm:$0xff]  }
 0x3df   :  { %vm2469_vm10 = vcmp.ge.f32.partialorder %v2465_v41, 0.0  ;;  %v2473_v38 = vmul.f32 0.01, %v2465_v41  ;;  %vm2471_vm11 = vcmp.ge.f32.partialorder %v2467_v40, 0.0  ;;  %v2475_v45 = vmul.f32 0.01, %v2467_v40 }
 0x3e0   :  { %vm2468_vm12 = vcmp.ge.f32.partialorder %v2464_v43, 0.0  ;;  %v2472_v19 = vmul.f32 0.01, %v2464_v43  ;;  %vm2470_vm13 = vcmp.ge.f32.partialorder %v2466_v44, 0.0  ;;  %v2474_v12 = vmul.f32 0.01, %v2466_v44 }
 0x3e1   :  { %v2477_v46 = vsel %vm2469_vm10, %v2465_v41, %v2473_v38  ;;  %v2479_v23 = vsel %vm2471_vm11, %v2467_v40, %v2475_v45  ;;  %v4614_v14 = vld [vmem:[#allocation7 + $0x1ac] ss:$16 sps:$4 sm:$0xff]   ;;  %v4618_v39 = vld [vmem:[#allocation7 + $0x168] ss:$16 sps:$4 sm:$0xff]  }
 0x3e2   :  { %v2481_v11 = vpack.c.bf16 %v2477_v46, %v2477_v46  ;;  %v2483_v47 = vpack.c.bf16 %v2479_v23, %v2479_v23  ;;  %v2476_v51 = vsel %vm2468_vm12, %v2464_v43, %v2472_v19  ;;  %v2478_v52 = vsel %vm2470_vm13, %v2466_v44, %v2474_v12  ;;  %v4617_v57 = vld [vmem:[#allocation7 + $0x18c] ss:$16 sps:$4 sm:$0xff]   ;;  %v4621_v41 = vld [vmem:[#allocation7 + $0x148] ss:$16 sps:$4 sm:$0xff]   ;;  %v4633_v23 = vld [vmem:[%s5351_s17 + $0xb0] sm:$0xff]  }
 0x3e3   :  { %v5161_v53 = vpack.c.bf16 %v2476_v51, %v2476_v51  ;;  %v5163_v54 = vpack.c.bf16 %v2478_v52, %v2478_v52  ;;  %v4620_v35 = vld [vmem:[#allocation7 + $0x16c] ss:$16 sps:$4 sm:$0xff]   ;;  %v4624_v44 = vld [vmem:[#allocation7 + $0x128] ss:$16 sps:$4 sm:$0xff]   ;;  %v4639_v52 = vld [vmem:[%s5351_s17 + $0xa0] sm:$0xff]  }
 0x3e4   :  { %3141 = vmatprep.mubr.bf16.mxu0 %v2481_v11  ;;  %4109 = vmatprep.mubr.msk.bf16.mxu1 %vm295_vm3, %v2483_v47  ;;  %v4623_v40 = vld [vmem:[#allocation7 + $0x14c] ss:$16 sps:$4 sm:$0xff]   ;;  %v4627_v45 = vld [vmem:[#allocation7 + $0x108] ss:$16 sps:$4 sm:$0xff]  }
 0x3e5   :  { %3142 = vmatmul.mubr.bf16.vlgmr.msra.gmra.mxu0 %v5161_v53  ;;  %3183 = vmatmul.mubr.bf16.vlgmr.msra.gmra.mxu1 %v5163_v54  ;;  %v4626_v43 = vld [vmem:[#allocation7 + $0x12c] ss:$16 sps:$4 sm:$0xff]  }
 0x3e6   :  { %3192 = vmatpush1.bf16.msra.mxu1 %v4555_v48  ;;  %3233 = vmatpush1.bf16.msra.mxu0 %v4558_v49  ;;  %v4629_v38 = vld [vmem:[#allocation7 + $0x10c] ss:$16 sps:$4 sm:$0xff]  }
 0x3e7   :  { %3223 = vmatprep.mubr.bf16.mxu1 %v2481_v11  ;;  %4110 = vmatprep.mubr.msk.bf16.mxu0 %vm295_vm3, %v2483_v47  ;;  %v4630_v19 = vld [vmem:[%s5351_s17 + $0xb8] sm:$0xff]   ;;  %v4634_v11 = vld [vmem:[%s5351_s17 + $0x70] sm:$0xff]   ;;  %v4636_v48 = vld [vmem:[%s5351_s17 + $0xa8] sm:$0xff]  }
 0x3e8   :  { %3193 = vmatprep.subr.bf16.mxu1 %v4563_v9  ;;  %3234 = vmatprep.subr.bf16.mxu0 %v4566_v17  ;;  %v4631_v12 = vld [vmem:[%s5351_s17 + $0x78] sm:$0xff]   ;;  %v4635_v47 = vld [vmem:[%s5351_s17 + $0x30] sm:$0xff]   ;;  %v4637_v49 = vld [vmem:[%s5351_s17 + $0x68] sm:$0xff]  }
 0x3e9   :  { %v4632_v46 = vld [vmem:[%s5351_s17 + $0x38] sm:$0xff]   ;;  %v4638_v51 = vld [vmem:[%s5351_s17 + $0x28] sm:$0xff]   ;;  %v4641_v9 = vld [vmem:[%s5351_s17 + $0x20] sm:$0xff]  }
 0x3ea   :  { %3194 = vmatpush1.bf16.msra.mxu1 %v4561_v55  ;;  %3235 = vmatpush1.bf16.msra.mxu0 %v4564_v36  ;;  %v4642_v17 = vld [vmem:[%s5351_s17 + $0x98] sm:$0xff]  }
 0x3eb   :  { %3195 = vmatprep.subr.bf16.mxu1 %v4569_v30  ;;  %3236 = vmatprep.subr.bf16.mxu0 %v4572_v56  ;;  %v4643_v36 = vld [vmem:[%s5351_s17 + $0x58] sm:$0xff]   ;;  %v4645_v56 = vld [vmem:[%s5351_s17 + $0x90] sm:$0xff]  }
 0x3ec   :  { %v4644_v30 = vld [vmem:[%s5351_s17 + $0x18] sm:$0xff]  }
 0x3ee   :  { %3196 = vmatpush1.bf16.msra.mxu1 %v4567_v58  ;;  %3237 = vmatpush1.bf16.msra.mxu0 %v4570_v60 }
 0x3ef   :  { %3197 = vmatprep.subr.bf16.mxu1 %v4575_v61  ;;  %3238 = vmatprep.subr.bf16.mxu0 %v4578_v62 }
 0x3f2   :  { %3198 = vmatpush1.bf16.msra.mxu1 %v4573_v4  ;;  %3239 = vmatpush1.bf16.msra.mxu0 %v4576_v7  ;;  %v4646_v4 = vld [vmem:[%s5351_s17 + $0x50] sm:$0xff]  }
 0x3f3   :  { %3199 = vmatprep.subr.bf16.mxu1 %v4581_v42  ;;  %3240 = vmatprep.subr.bf16.mxu0 %v4584_v8  ;;  %v4647_v8 = vld [vmem:[%s5351_s17 + $0x10] sm:$0xff]  }
 0x3f6   :  { %3200 = vmatpush1.bf16.msra.mxu1 %v4579_v10  ;;  %3241 = vmatpush1.bf16.msra.mxu0 %v4582_v1  ;;  %v4648_v10 = vld [vmem:[%s5351_s17 + $0x88] sm:$0xff]  }
 0x3f7   :  { %3201 = vmatprep.subr.bf16.mxu1 %v4587_v13  ;;  %3242 = vmatprep.subr.bf16.mxu0 %v4590_v15 }
 0x3fa   :  { %3202 = vmatpush1.bf16.msra.mxu1 %v4585_v18  ;;  %3243 = vmatpush1.bf16.msra.mxu0 %v4588_v20 }
 0x3fb   :  { %3203 = vmatprep.subr.bf16.mxu1 %v4593_v63  ;;  %3244 = vmatprep.subr.bf16.mxu0 %v4596_v21 }
 0x3fe   :  { %3204 = vmatpush1.bf16.msra.mxu1 %v4591_v22  ;;  %3245 = vmatpush1.bf16.msra.mxu0 %v4594_v24  ;;  %v4649_v22 = vld [vmem:[%s5351_s17 + $0x48] sm:$0xff]  }
 0x3ff   :  { %3205 = vmatprep.subr.bf16.mxu1 %v4599_v25  ;;  %3246 = vmatprep.subr.bf16.mxu0 %v4602_v26  ;;  %v4650_v26 = vld [vmem:[%s5351_s17 + $0x8] sm:$0xff]  }
 0x402   :  { %3206 = vmatpush1.bf16.msra.mxu1 %v4597_v27  ;;  %3247 = vmatpush1.bf16.msra.mxu0 %v4600_v28  ;;  %v4651_v27 = vld [vmem:[%s5351_s17 + $0x80] sm:$0xff]  }
 0x403   :  { %3207 = vmatprep.subr.bf16.mxu1 %v4605_v29  ;;  %3262 = vmatprep.subr.bf16.mxu0 %v4608_v31  ;;  %v4652_v28 = vld [vmem:[%s5351_s17 + $0x40] sm:$0xff]  }
 0x406   :  { %3208 = vmatpush2.bf16.msra.mxu1 %v4603_v16  ;;  %3263 = vmatpush2.bf16.msra.mxu0 %v4606_v32 }
 0x407   :  { %3209 = vmatprep.subr.bf16.mxu1 %v4611_v33  ;;  %4138 = vmatprep.subr.bf16.mxu0 %v4631_v12  ;;  %v4653_v33 = vld [vmem:[%s5351_s17] sm:$0xff]  }
 0x409   :  { %3265 = vmatmul.mubr.bf16.vlgmr.msra.gmra.mxu0 %v5163_v54  ;;  %v5212_v54 = vld [vmem:[%s5348_s14] sm:$0xf]  ;;  %s3785_s14 = sshll.u32 %s4780_s30, 4  ;;  %s3786_s14 = int_to_ptr.vmem [resolvable:$true] %s3785_s14 }
 0x40a   :  { %3210 = vmatpush2.bf16.msra.mxu1 %v4609_v50  ;;  %4139 = vmatpush3.bf16.msra.mxu0 %v4632_v46  ;;  %v2589_v55 = vrot.slane %v5212_v54, %v4922_v2  ;;  %v2593_v58 = vrot.slane %v5212_v54, %v4931_v5  ;;  %v4654_v50 = vld [vmem:[%s5351_s17 + $0xc0] sm:$0xff]   ;;  %s4747_s20 = scalar_lea.vmem %s3786_s14, 128  ;;  %p4752_p2 = scmp.lt.s32.totalorder %s3786_s14, %s3786_s14 }
 0x40b   :  { %3211 = vmatprep.subr.bf16.mxu1 %v4614_v14  ;;  %4140 = vmatprep.subr.bf16.mxu0 %v4634_v11  ;;  %p4748_p1 = scmp.ne.s32.totalorder %s3786_s14, %s4747_s20  ;;  %p4753_p3 = scmp.lt.s32.totalorder %s4747_s20, %s4747_s20 }
 0x40d   :  { %p4754_p4 = por %p4753_p3, %p4752_p2 }
 0x40e   :  { %3212 = vmatpush2.bf16.msra.mxu1 %v4612_v37  ;;  %4141 = vmatpush3.bf16.msra.mxu0 %v4635_v47 }
 0x40f   :  { %3213 = vmatprep.subr.bf16.mxu1 %v4617_v57  ;;  %4142 = vmatprep.subr.bf16.mxu0 %v4637_v49  ;;  %p4755_p5 = pnand %p4754_p4, %p4748_p1 }
 0x412   :  { %3214 = vmatpush2.bf16.msra.mxu1 %v4615_v34  ;;  %4143 = vmatpush3.bf16.msra.mxu0 %v4638_v51 }
 0x413   :  { %3215 = vmatprep.subr.bf16.mxu1 %v4620_v35 }
 0x416   :  { %3216 = vmatpush2.bf16.msra.mxu1 %v4618_v39 }
 0x417   :  { %3217 = vmatprep.subr.bf16.mxu1 %v4623_v40 }
 0x41a   :  { %3218 = vmatpush2.bf16.msra.mxu1 %v4621_v41 }
 0x41b   :  { %3219 = vmatprep.subr.bf16.mxu1 %v4626_v43 }
 0x41e   :  { %3220 = vmatpush2.bf16.msra.mxu1 %v4624_v44 }
 0x41f   :  { %3221 = vmatprep.subr.bf16.mxu1 %v4629_v38 }
 0x422   :  { %3222 = vmatpush2.bf16.msra.mxu1 %v4627_v45 }
 0x423   :  { %3737 = vmatprep.subr.bf16.mxu1 %v4778_v0 }
 0x425   :  { %3224 = vmatmul.mubr.bf16.vlgmr.msra.gmra.mxu1 %v5161_v53  ;;  %v4640_v53 = vld [vmem:[%s5351_s17 + $0x60] sm:$0xff]  }
 0x426   :  { %3738 = vmatpush1.bf16.msra.mxu1 %v4630_v19  ;;  %4144 = vmatprep.subr.bf16.mxu0 %v4640_v53 }
 0x427   :  { %3739 = vmatprep.subr.bf16.mxu1 %v4778_v0  ;;  %4145 = vmatpush3.bf16.msra.mxu0 %v4641_v9 }
 0x428   :  { %4146 = vmatprep.subr.bf16.mxu0 %v4643_v36 }
 0x42a   :  { %3740 = vmatpush1.bf16.msra.mxu1 %v4633_v23 }
 0x42b   :  { %3741 = vmatprep.subr.bf16.mxu1 %v4778_v0  ;;  %4147 = vmatpush3.bf16.msra.mxu0 %v4644_v30 }
 0x42c   :  { %4148 = vmatprep.subr.bf16.mxu0 %v4646_v4 }
 0x42e   :  { %3742 = vmatpush1.bf16.msra.mxu1 %v4636_v48 }
 0x42f   :  { %3743 = vmatprep.subr.bf16.mxu1 %v4778_v0  ;;  %4149 = vmatpush3.bf16.msra.mxu0 %v4647_v8 }
 0x430   :  { %4150 = vmatprep.subr.bf16.mxu0 %v4649_v22 }
 0x432   :  { %3744 = vmatpush1.bf16.msra.mxu1 %v4639_v52 }
 0x433   :  { %3745 = vmatprep.subr.bf16.mxu1 %v4778_v0  ;;  %4151 = vmatpush3.bf16.msra.mxu0 %v4650_v26 }
 0x434   :  { %4152 = vmatprep.subr.bf16.mxu0 %v4652_v28 }
 0x436   :  { %3746 = vmatpush1.bf16.msra.mxu1 %v4642_v17 }
 0x437   :  { %3747 = vmatprep.subr.bf16.mxu1 %v4778_v0  ;;  %4153 = vmatpush3.bf16.msra.mxu0 %v4653_v33 }
 0x43a   :  { %3748 = vmatpush1.bf16.msra.mxu1 %v4645_v56 }
 0x43b   :  { %3749 = vmatprep.subr.bf16.mxu1 %v4778_v0 }
 0x43e   :  { %3750 = vmatpush1.bf16.msra.mxu1 %v4648_v10 }
 0x43f   :  { %3751 = vmatprep.subr.bf16.mxu1 %v4778_v0 }
 0x442   :  { %3752 = vmatpush1.bf16.msra.mxu1 %v4651_v27 }
 0x443   :  { %3767 = vmatprep.subr.bf16.mxu1 %v4778_v0 }
 0x446   :  { %3768 = vmatpush2.bf16.msra.mxu1 %v4654_v50 }
 0x4a5   :  { %v3143_v60 = vpop.f32.mrf.mxu0  ;;  %v3184_v61 = vpop.f32.mrf.mxu1 }
 0x4a6   :  { %v3144_v62 = vadd.f32 %v3143_v60, %v2589_v55 }
 0x4a7   :  { %v3145_v7 = vpop.f32.mrf.mxu0  ;;  %v3186_v42 = vpop.f32.mrf.mxu1 }
 0x4a8   :  { %v5244_v1 = vadd.f32 %v3184_v61, %v3144_v62  ;;  %v3146_v13 = vadd.f32 %v3145_v7, %v2593_v58 }
 0x4a9   :  { %v3147_v15 = vpop.f32.mrf.mxu0  ;;  %v3188_v18 = vpop.f32.mrf.mxu1 }
 0x4aa   :  { %v3275_v20 = vrot.slane %v5244_v1, 4  ;;  %v3300_v63 = vmul.f32 %v5244_v1, %v5244_v1  ;;  %v5249_v21 = vadd.f32 %v3186_v42, %v3146_v13  ;;  %v2597_v13 = vrot.slane %v5212_v54, %v4925_v3 }
 0x4ab   :  { %v3148_v24 = vpop.f32.mrf.mxu0  ;;  %v3189_v25 = vpop.f32.mrf.mxu1  ;;  %v2601_v15 = vrot.slane %v5212_v54, %v4934_v6 }
 0x4ac   :  { %v3276_v29 = vadd.f32 %v3275_v20, %v5244_v1  ;;  %v3304_v31 = vrot.slane %v3300_v63, 4  ;;  %v3281_v16 = vrot.slane %v5249_v21, 4  ;;  %v3301_v32 = vmul.f32 %v5249_v21, %v5249_v21 }
 0x4ae   :  { %v3277_v14 = vrot.slane %v3276_v29, 2  ;;  %v3305_v37 = vadd.f32 %v3304_v31, %v3300_v63  ;;  %v3282_v57 = vadd.f32 %v3281_v16, %v5249_v21  ;;  %v3310_v34 = vrot.slane %v3301_v32, 4 }
 0x4b0   :  { %v3278_v35 = vadd.f32 %v3277_v14, %v3276_v29  ;;  %v3306_v39 = vrot.slane %v3305_v37, 2  ;;  %v3283_v40 = vrot.slane %v3282_v57, 2  ;;  %v3311_v41 = vadd.f32 %v3310_v34, %v3301_v32 }
 0x4b2   :  { %v3279_v43 = vrot.slane %v3278_v35, 1  ;;  %v3307_v44 = vadd.f32 %v3306_v39, %v3305_v37  ;;  %v3284_v38 = vadd.f32 %v3283_v40, %v3282_v57  ;;  %v3312_v45 = vrot.slane %v3311_v41, 2 }
 0x4b4   :  { %v3280_v19 = vadd.f32 %v3279_v43, %v3278_v35  ;;  %v3308_v12 = vrot.slane %v3307_v44, 1  ;;  %v3285_v46 = vrot.slane %v3284_v38, 1  ;;  %v3313_v23 = vadd.f32 %v3312_v45, %v3311_v41 }
 0x4b6   :  { %v3309_v11 = vadd.f32 %v3308_v12, %v3307_v44  ;;  %v5276_v47 = vmul.f32 0.125, %v3280_v19  ;;  %v3286_v48 = vadd.f32 %v3285_v46, %v3284_v38  ;;  %v3314_v49 = vrot.slane %v3313_v23, 1 }
 0x4b8   :  { %v3333_v0 = vmul.f32 0.125, %v3309_v11  ;;  %v3337_v51 = vmul.f32 %v5276_v47, %v5276_v47  ;;  %v3315_v52 = vadd.f32 %v3314_v49, %v3313_v23  ;;  %v5280_v53 = vmul.f32 0.125, %v3286_v48 }
 0x4ba   :  { %v3341_v9 = vsub.f32 %v3333_v0, %v3337_v51  ;;  %v3334_v17 = vmul.f32 0.125, %v3315_v52  ;;  %v3338_v55 = vmul.f32 %v5280_v53, %v5280_v53 }
 0x4bc   :  { %v3345_v36 = vmax.f32 %v3341_v9, 0.0  ;;  %v3342_v30 = vsub.f32 %v3334_v17, %v3338_v55 }
 0x4be   :  { %v3349_v56 = vadd.f32 1e-05, %v3345_v36  ;;  %v3346_v58 = vmax.f32 %v3342_v30, 0.0 }
 0x4c0   :  { %v3350_v60 = vadd.f32 1e-05, %v3346_v58  ;;  %4679 = vrsqrt.f32 %v3349_v56 }
 0x4c2   :  { %4681 = vrsqrt.f32 %v3350_v60 }
 0x4c9   :  { %v3266_v61 = vpop.f32.mrf.mxu0 }
 0x4cb   :  { %v3268_v62 = vpop.f32.mrf.mxu0 }
 0x4cd   :  { %v3270_v4 = vpop.f32.mrf.mxu0  ;;  %v4680_v7 = vpop.eup %4679 }
 0x4cf   :  { %v4682_v42 = vpop.eup %4681  ;;  %v3271_v8 = vpop.f32.mrf.mxu0 }
 0x4d0   :  { %v3361_v10 = vcombine.low %v4680_v7, %v4682_v42 }
 0x4d2   :  { %v3369_v8 = vrot.slane %v3361_v10, %v4970_v59 }
 0x4e5   :  { %v3225_v18 = vpop.f32.mrf.mxu1 }
 0x4e6   :  { %v3226_v20 = vadd.f32 %v3225_v18, %v2597_v13  ;;  %v3273_v18 = vld [vmem:[%s5349_s15] sm:$0xf] }
 0x4e7   :  { %v3227_v63 = vpop.f32.mrf.mxu1 }
 0x4e8   :  { %v5288_v22 = vadd.f32 %v3266_v61, %v3226_v20  ;;  %v3228_v24 = vadd.f32 %v3227_v63, %v2601_v15 }
 0x4e9   :  { %v3229_v25 = vpop.f32.mrf.mxu1 }
 0x4ea   :  { %v3287_v26 = vrot.slane %v5288_v22, 4  ;;  %v3302_v27 = vmul.f32 %v5288_v22, %v5288_v22  ;;  %v5293_v28 = vadd.f32 %v3268_v62, %v3228_v24 }
 0x4eb   :  { %v3230_v29 = vpop.f32.mrf.mxu1 }
 0x4ec   :  { %v3288_v31 = vadd.f32 %v3287_v26, %v5288_v22  ;;  %v3316_v16 = vrot.slane %v3302_v27, 4  ;;  %v3293_v54 = vsel %vm295_vm3, %v5293_v28, 0.0  ;;  %v3303_v32 = vmul.f32 %v5293_v28, %v5293_v28 }
 0x4ed   :  { %v3294_v33 = vrot.slane %v3293_v54, 4 }
 0x4ee   :  { %v3289_v50 = vrot.slane %v3288_v31, 2  ;;  %v3317_v14 = vadd.f32 %v3316_v16, %v3302_v27  ;;  %v3322_v37 = vsel %vm295_vm3, %v3303_v32, 0.0 }
 0x4ef   :  { %v3295_v57 = vadd.f32 %v3294_v33, %v3293_v54  ;;  %v3323_v34 = vrot.slane %v3322_v37, 4 }
 0x4f0   :  { %v3290_v35 = vadd.f32 %v3289_v50, %v3288_v31  ;;  %v3318_v39 = vrot.slane %v3317_v14, 2 }
 0x4f1   :  { %v3296_v40 = vrot.slane %v3295_v57, 2  ;;  %v3324_v41 = vadd.f32 %v3323_v34, %v3322_v37  ;;  %v3274_v34 = vld [vmem:[%s5350_s16] sm:$0xf] }
 0x4f2   :  { %v3291_v43 = vrot.slane %v3290_v35, 1  ;;  %v3319_v44 = vadd.f32 %v3318_v39, %v3317_v14 }
 0x4f3   :  { %v3297_v38 = vadd.f32 %v3296_v40, %v3295_v57  ;;  %v3325_v45 = vrot.slane %v3324_v41, 2 }
 0x4f4   :  { %v3292_v19 = vadd.f32 %v3291_v43, %v3290_v35  ;;  %v3320_v12 = vrot.slane %v3319_v44, 1 }
 0x4f5   :  { %v3298_v46 = vrot.slane %v3297_v38, 1  ;;  %v3326_v23 = vadd.f32 %v3325_v45, %v3324_v41 }
 0x4f6   :  { %v3321_v11 = vadd.f32 %v3320_v12, %v3319_v44  ;;  %v3331_v48 = vmul.f32 0.125, %v3292_v19 }
 0x4f7   :  { %v3299_v49 = vadd.f32 %v3298_v46, %v3297_v38  ;;  %v3327_v0 = vrot.slane %v3326_v23, 1 }
 0x4f8   :  { %v3335_v51 = vmul.f32 0.125, %v3321_v11  ;;  %v3339_v52 = vmul.f32 %v3331_v48, %v3331_v48 }
 0x4f9   :  { %v3328_v9 = vadd.f32 %v3327_v0, %v3326_v23  ;;  %v3332_v17 = vmul.f32 0.125, %v3299_v49  ;;  %v4111_v0 = vld [vmem:[%s5352_s18] ss:$0 sm:$0xff] }
 0x4fa   :  { %v3343_v55 = vsub.f32 %v3335_v51, %v3339_v52 }
 0x4fb   :  { %v3336_v36 = vmul.f32 0.125, %v3328_v9  ;;  %v3340_v30 = vmul.f32 %v3332_v17, %v3332_v17 }
 0x4fc   :  { %v3347_v56 = vmax.f32 %v3343_v55, 0.0 }
 0x4fd   :  { %v3344_v58 = vsub.f32 %v3336_v36, %v3340_v30 }
 0x4fe   :  { %v3351_v60 = vadd.f32 1e-05, %v3347_v56 }
 0x4ff   :  { %v3348_v61 = vmax.f32 %v3344_v58, 0.0 }
 0x500   :  { %4683 = vrsqrt.f32 %v3351_v60 }
 0x501   :  { %v3352_v62 = vadd.f32 1e-05, %v3348_v61 }
 0x503   :  { %4685 = vrsqrt.f32 %v3352_v62 }
 0x50d   :  { %v4684_v4 = vpop.eup %4683 }
 0x510   :  { %v4686_v7 = vpop.eup %4685 }
 0x511   :  { %v3362_v42 = vcombine.low %v4684_v4, %v4686_v7 }
 0x513   :  { %v3376_v13 = vrot.slane %v3362_v42, %v4970_v59 }
 0x515   :  { %v3377_v15 = vcombine.low %v3369_v8, %v3376_v13 }
 0x517   :  { %v3384_v20 = vrot.slane %v3377_v15, %v4970_v59 }
 0x519   :  { %v3386_v63 = vmul.f32 %v3384_v20, %v3273_v18 }
 0x51b   :  { %v3391_v24 = vrot.slane %v3386_v63, %v4922_v2  ;;  %v3395_v25 = vrot.slane %v3386_v63, %v4931_v5  ;;  %v3399_v26 = vrot.slane %v3386_v63, %v4925_v3  ;;  %v3403_v27 = vrot.slane %v3386_v63, %v4934_v6 }
 0x51d   :  { %v3408_v10 = vmul.f32 %v3391_v24, %v5276_v47  ;;  %v3409_v29 = vmul.f32 %v3395_v25, %v5280_v53  ;;  %v3410_v31 = vmul.f32 %v3399_v26, %v3331_v48  ;;  %v3411_v16 = vmul.f32 %v3403_v27, %v3332_v17 }
 0x51e   :  { %v3443_v54 = vmul.f32 %v3395_v25, %v5249_v21  ;;  %v3442_v32 = vmul.f32 %v3391_v24, %v5244_v1  ;;  %v3445_v35 = vmul.f32 %v3403_v27, %v5293_v28  ;;  %v3444_v21 = vmul.f32 %v3399_v26, %v5288_v22 }
 0x51f   :  { %v3416_v33 = vcombine.low %v3408_v10, %v3409_v29  ;;  %v3417_v50 = vcombine.low %v3410_v31, %v3411_v16 }
 0x521   :  { %v3424_v14 = vrot.slane %v3416_v33, %v4970_v59  ;;  %v3431_v37 = vrot.slane %v3417_v50, %v4970_v59 }
 0x523   :  { %v3432_v57 = vcombine.low %v3424_v14, %v3431_v37 }
 0x525   :  { %v3439_v47 = vrot.slane %v3432_v57, %v4970_v59 }
 0x527   :  { %v3441_v53 = vsub.f32 %v3274_v34, %v3439_v47 }
 0x529   :  { %v3462_v1 = vrot.slane %v3441_v53, %v4934_v6  ;;  %v3454_v39 = vrot.slane %v3441_v53, %v4931_v5  ;;  %v3450_v40 = vrot.slane %v3441_v53, %v4922_v2  ;;  %v3458_v41 = vrot.slane %v3441_v53, %v4925_v3 }
 0x52b   :  { %v3470_v43 = vadd.f32 %v3462_v1, %v3445_v35  ;;  %v3468_v44 = vadd.f32 %v3454_v39, %v3443_v54  ;;  %v3467_v38 = vadd.f32 %v3450_v40, %v3442_v32  ;;  %v3469_v45 = vadd.f32 %v3458_v41, %v3444_v21 }
 0x52d   :  { %vm3472_vm14 = vcmp.ge.f32.partialorder %v3468_v44, 0.0  ;;  %v3476_v19 = vmul.f32 0.01, %v3468_v44  ;;  %vm3474_vm15 = vcmp.ge.f32.partialorder %v3470_v43, 0.0  ;;  %v3478_v59 = vmul.f32 0.01, %v3470_v43 }
 0x52e   :  { %vm3471_vm0 = vcmp.ge.f32.partialorder %v3467_v38, 0.0  ;;  %v3475_v28 = vmul.f32 0.01, %v3467_v38  ;;  %vm3473_vm1 = vcmp.ge.f32.partialorder %v3469_v45, 0.0  ;;  %v3477_v22 = vmul.f32 0.01, %v3469_v45 }
 0x52f   :  { %v3480_v12 = vsel %vm3472_vm14, %v3468_v44, %v3476_v19  ;;  %v3482_v6 = vsel %vm3474_vm15, %v3470_v43, %v3478_v59 }
 0x530   :  { %v3484_v46 = vpack.c.bf16 %v3480_v12, %v3480_v12  ;;  %v3486_v5 = vpack.c.bf16 %v3482_v6, %v3482_v6  ;;  %v3479_v23 = vsel %vm3471_vm0, %v3467_v38, %v3475_v28  ;;  %v3481_v2 = vsel %vm3473_vm1, %v3469_v45, %v3477_v22 }
 0x531   :  { %v3483_v11 = vpack.c.bf16 %v3479_v23, %v3479_v23  ;;  %v3485_v3 = vpack.c.bf16 %v3481_v2, %v3481_v2 }
 0x532   :  { %3729 = vmatprep.mubr.bf16.mxu0 %v3484_v46  ;;  %4137 = vmatprep.mubr.msk.bf16.mxu1 %vm295_vm3, %v3486_v5 }
 0x533   :  { %3730 = vmatmul.mubr.bf16.vlgmr.msra.gmra.mxu0 %v3483_v11  ;;  %3770 = vmatmul.mubr.bf16.vlgmr.msra.gmra.mxu1 %v3485_v3 }
 0x5f3   :  { %v4154_v48 = vpop.f32.mrf.mxu0  ;;  %v3771_v49 = vpop.f32.mrf.mxu1 }
 0x5f5   :  { %v4155_v51 = vpop.f32.mrf.mxu0  ;;  %v3773_v52 = vpop.f32.mrf.mxu1 }
 0x5f6   :  { %v4156_v9 = vadd.f32 %v4155_v51, %v4154_v48 }
 0x5f7   :  { %v4157_v17 = vpop.f32.mrf.mxu0  ;;  %v3774_v55 = vpop.f32.mrf.mxu1 }
 0x5f8   :  { %v3732_v36 = vadd.f32 %v4156_v9, %v4111_v0 }
 0x5f9   :  { %v4158_v30 = vpop.f32.mrf.mxu0  ;;  %v3775_v56 = vpop.f32.mrf.mxu1 }
 0x5fa   :  { %v3772_v58 = vadd.f32 %v3771_v49, %v3732_v36 }
 0x5fc   :  { %3778 = vst.msk [vmem:[#allocation8] sm:$0xff] %vm3777_vm2, %v3772_v58 }
 0x5fd   :  { %4758 = shalt.err (!%p4755_p5)
}
 0x5fe   :  { %3788 = dma.vmem_to_hbm [thread:$0]  %s3786_s14, 128, %s5353_s19, [#allocation4]  }
 0x5ff   :  { %4771 = dma.done.wait [#allocation4], 128  }
 0x600   :  { %4772 = vsyncadd [#allocation4], 4294967168 }
 0x601   :  { %3792 = vsyncpa [#allocation3], 1 }
 0x602   :  { %3793 = vsyncpa [#allocation6], 1 }
 0x603   :  { %3794 = vsyncpa [#allocation4], 1 }

</bundles_post_ra>
